<compile_context>
chip_gen: v5e
topology: v5e:2x2
jax: 0.10.0
libtpu: 0.0.40
codegen_flags: <defaults>
</compile_context>

<pallas_src>
import jax
import jax.numpy as jnp
import numpy as np
from jax.experimental import pallas as pl
from jax.experimental.pallas import tpu as pltpu


def _make_kernel(Tm1, F, H, Bb):
    def kernel(x_ref, wx_ref, w_ih_t_ref, w_hh_t_ref, b_ref,
               x_atn_ref, x_enc_ref, gx_sc):
        x = x_ref[...]                               # (Bb, Tm1, F)

        # ---- Step-invariant attention weights (softmax hoist) ----------------
        # score[b, f] = w_h.h + w_c.c + sum_t w_x[t]*x[b,t,f] + bias; the h/c
        # and bias terms are constant over f and cancel under the softmax over
        # f, so a = softmax_f(sum_t w_x[t] * x[:, t, :]) is identical for every
        # timestep.  Computed once, off the serial chain, exact divide.
        wx = wx_ref[...]                             # (Tm1, 1)
        x_score = jnp.sum(x * wx[None, :, :], axis=1)            # (Bb, F)
        x_score = x_score - jnp.max(x_score, axis=1, keepdims=True)
        e = jnp.exp(x_score)
        a = e / jnp.sum(e, axis=1, keepdims=True)

        # ---- Attended inputs, all timesteps, one store ------------------------
        x_atn = x * a[:, None, :]                    # (Bb, Tm1, F)
        x_atn_ref[...] = x_atn

        # ---- Batched input-side gate pre-activations (one MXU call) -----------
        # Rows ordered (b, t): M = Bb*Tm1 instead of Tm1 pushes with M = Bb,
        # far better MXU row occupancy, and all of it is off the h-chain.
        xr = x_atn.reshape(Bb * Tm1, F)              # leading-dim merge (tile-aligned)
        gx_all = jnp.dot(xr, w_ih_t_ref[...],
                         preferred_element_type=jnp.float32) + b_ref[...]
        # Stage in VMEM scratch so the unrolled loop reads one (Bb, 4H) slab per
        # step instead of keeping Tm1 gate vregs live across the recurrence.
        gx_sc[...] = gx_all.reshape(Bb, Tm1, 4 * H)

        # ---- Serial LSTM recurrence (PyTorch gate order: i, f, g, o) ----------
        # g-gate columns of W_ih^T, W_hh^T and bias were pre-scaled by 2 in the
        # wrapper, so tanh(z) = 2*sigmoid(2z) - 1 leaves a single full-width
        # sigmoid per step on the EUP (plus the narrow tanh(c)).
        # TODO(synk): on v5e, if the bundle dump shows W_hh^T re-pushed as MXU
        # RHS every step, switch to pltpu.matmul_push_rhs / matmul_acc_lhs.
        w_hh_t = w_hh_t_ref[...]                     # (H, 4H)
        h = jnp.zeros((Bb, H), jnp.float32)
        c = jnp.zeros((Bb, H), jnp.float32)
        for t in range(Tm1):
            gates = gx_sc[:, t, :] + jnp.dot(h, w_hh_t,
                                             preferred_element_type=jnp.float32)
            sig = jax.nn.sigmoid(gates)              # one full-width EUP pass
            i_g = sig[:, 0 * H:1 * H]
            f_g = sig[:, 1 * H:2 * H]
            g_g = 2.0 * sig[:, 2 * H:3 * H] - 1.0    # == tanh(original g pre-act)
            o_g = sig[:, 3 * H:4 * H]
            c = f_g * c + i_g * g_g
            h = o_g * jnp.tanh(c)
            # Lane-dense (Tm1*H)-wide output row; static lane offset t*H.
            x_enc_ref[:, t * H:(t + 1) * H] = h

    return kernel


def _pick_block(B):
    # Prefer few, fat batch blocks: batch is the only source of MXU rows (the
    # time axis is serial), and each grid step costs ~0.35us fixed overhead.
    # Only split when it yields >= 2 blocks so a second TensorCore (v7x
    # megacore) actually gets work.
    for bb in (128, 64, 32, 16, 8):
        if B % bb == 0 and B // bb >= 2:
            return bb
    return B


def encoder_rnn_forward(x, params, T, hidden):
    """Pallas implementation of encoder_RNN.forward."""
    B, Tm1, F = x.shape
    assert Tm1 == T - 1
    H = hidden
    w_ih, w_hh, b_ih, b_hh, lin_w, lin_b = params

    w_ih_t = jnp.asarray(w_ih, jnp.float32).T                        # (F, 4H)
    w_hh_t = jnp.asarray(w_hh, jnp.float32).T                        # (H, 4H)
    b = (jnp.asarray(b_ih) + jnp.asarray(b_hh)).reshape(1, 4 * H).astype(jnp.float32)

    # tanh(z) = 2*sigmoid(2z) - 1: pre-scale the g-gate (cell-input) columns of
    # the input/hidden weights and bias by 2 so the kernel needs only one
    # full-width sigmoid pass per recurrence step.
    gsel = jnp.concatenate([jnp.ones((2 * H,), jnp.float32),
                            jnp.full((H,), 2.0, jnp.float32),
                            jnp.ones((H,), jnp.float32)])            # (4H,)
    w_ih_t = w_ih_t * gsel[None, :]
    w_hh_t = w_hh_t * gsel[None, :]
    b = b * gsel[None, :]

    # Only the x-part of the attention linear survives the softmax (h/c/bias
    # contributions cancel); ship it as a (Tm1, 1) broadcast operand.
    w_x = jnp.asarray(lin_w, jnp.float32).reshape(-1)[2 * H:].reshape(Tm1, 1)

    x_f32 = x.astype(jnp.float32)                                     # (B, Tm1, F)

    Bb = _pick_block(B)
    nb = B // Bb

    kernel = _make_kernel(Tm1, F, H, Bb)
    x_atn, x_enc_flat = pl.pallas_call(
        kernel,
        grid=(nb,),
        out_shape=(jax.ShapeDtypeStruct((B, Tm1, F), jnp.float32),
                   jax.ShapeDtypeStruct((B, Tm1 * H), jnp.float32)),
        in_specs=[
            pl.BlockSpec((Bb, Tm1, F), lambda i: (i, 0, 0)),          # x (natural layout)
            pl.BlockSpec((Tm1, 1), lambda i: (0, 0)),                 # attention x-weights
            pl.BlockSpec((F, 4 * H), lambda i: (0, 0)),               # W_ih^T (g cols x2)
            pl.BlockSpec((H, 4 * H), lambda i: (0, 0)),               # W_hh^T (g cols x2)
            pl.BlockSpec((1, 4 * H), lambda i: (0, 0)),               # bias   (g cols x2)
        ],
        out_specs=(
            pl.BlockSpec((Bb, Tm1, F), lambda i: (i, 0, 0)),
            pl.BlockSpec((Bb, Tm1 * H), lambda i: (i, 0)),
        ),
        scratch_shapes=[pltpu.VMEM((Bb, Tm1, 4 * H), jnp.float32)],   # staged gate pre-acts
        compiler_params=pltpu.CompilerParams(
            dimension_semantics=("parallel",)),
    )(x_f32, w_x, w_ih_t, w_hh_t, b)

    # Layout plumbing back to the PyTorch output convention (outside kernel).
    x_enc = x_enc_flat.reshape(B, Tm1, H)
    return x_atn, x_enc


def encoder_rnn_reference(x, params, T, hidden):
    """Pure-JAX reference mirroring the PyTorch forward literally."""
    B, Tm1, F = x.shape
    H = hidden
    w_ih, w_hh, b_ih, b_hh, lin_w, lin_b = params
    h = jnp.zeros((B, H), jnp.float32)
    c = jnp.zeros((B, H), jnp.float32)
    x_atn, x_enc = [], []
    for t in range(Tm1):
        e = jnp.concatenate([
            jnp.broadcast_to(h[:, None, :], (B, F, H)),
            jnp.broadcast_to(c[:, None, :], (B, F, H)),
            jnp.transpose(x, (0, 2, 1)),
        ], axis=2)                                             # (B, F, 2H+Tm1)
        score = e.reshape(-1, 2 * H + Tm1) @ lin_w.T + lin_b   # (B*F, 1)
        a = jax.nn.softmax(score.reshape(B, F), axis=1)
        x_atn_t = a * x[:, t, :]
        gates = x_atn_t @ w_ih.T + b_ih + h @ w_hh.T + b_hh
        i_g = jax.nn.sigmoid(gates[:, :H])
        f_g = jax.nn.sigmoid(gates[:, H:2 * H])
        g_g = jnp.tanh(gates[:, 2 * H:3 * H])
        o_g = jax.nn.sigmoid(gates[:, 3 * H:])
        c = f_g * c + i_g * g_g
        h = o_g * jnp.tanh(c)
        x_atn.append(x_atn_t)
        x_enc.append(h)
    return jnp.stack(x_atn, axis=1), jnp.stack(x_enc, axis=1)


if __name__ == "__main__":
    # Small shapes consistent with the module: batch=4, features=8, hidden=32, T=9.
    B, F, H, T = 4, 8, 32, 9
    Tm1 = T - 1

    key = jax.random.PRNGKey(0)
    kx, k1, k2, k3, k4, k5, k6 = jax.random.split(key, 7)

    # Deterministic parameter init (PyTorch-style uniform ranges).
    stdv = 1.0 / np.sqrt(H)
    w_ih = jax.random.uniform(k1, (4 * H, F), jnp.float32, -stdv, stdv)
    w_hh = jax.random.uniform(k2, (4 * H, H), jnp.float32, -stdv, stdv)
    b_ih = jax.random.uniform(k3, (4 * H,), jnp.float32, -stdv, stdv)
    b_hh = jax.random.uniform(k4, (4 * H,), jnp.float32, -stdv, stdv)
    lin_in = 2 * H + T - 1
    lstdv = 1.0 / np.sqrt(lin_in)
    lin_w = jax.random.uniform(k5, (1, lin_in), jnp.float32, -lstdv, lstdv)
    lin_b = jax.random.uniform(k6, (1,), jnp.float32, -lstdv, lstdv)
    params = (w_ih, w_hh, b_ih, b_hh, lin_w, lin_b)

    x = jax.random.normal(kx, (B, Tm1, F), jnp.float32)

    x_atn, x_enc = encoder_rnn_forward(x, params, T, H)
    jax.block_until_ready((x_atn, x_enc))

    ref_atn, ref_enc = encoder_rnn_reference(x, params, T, H)
    np.testing.assert_allclose(np.asarray(x_atn), np.asarray(ref_atn),
                               rtol=1e-3, atol=1e-3)
    np.testing.assert_allclose(np.asarray(x_enc), np.asarray(ref_enc),
                               rtol=1e-3, atol=1e-3)

    print("KERNEL_OK")
</pallas_src>

<mosaic_0001>
module attributes {stable_mosaic.version = 11 : i64} {
  func.func @kernel(%arg0: i32, %arg1: memref<4x8x8xf32, #tpu.memory_space<vmem>>, %arg2: memref<8x1xf32, #tpu.memory_space<vmem>>, %arg3: memref<8x128xf32, #tpu.memory_space<vmem>>, %arg4: memref<32x128xf32, #tpu.memory_space<vmem>>, %arg5: memref<1x128xf32, #tpu.memory_space<vmem>>, %arg6: memref<4x8x8xf32, #tpu.memory_space<vmem>>, %arg7: memref<4x256xf32, #tpu.memory_space<vmem>>, %arg8: memref<4x8x128xf32, #tpu.memory_space<vmem>>) attributes {dimension_semantics = [#tpu.dimension_semantics<parallel>], iteration_bounds = array<i64: 1>, scalar_prefetch = 0 : i64, scratch_operands = 1 : i64, tpu.core_type = #tpu.core_type<tc>, window_params = [{transform_indices = @transform_0, window_bounds = array<i64: 4, 8, 8>}, {pipeline_mode = #tpu.pipeline_mode<synchronous>, transform_indices = @transform_1, window_bounds = array<i64: 8, 1>}, {pipeline_mode = #tpu.pipeline_mode<synchronous>, transform_indices = @transform_2, window_bounds = array<i64: 8, 128>}, {pipeline_mode = #tpu.pipeline_mode<synchronous>, transform_indices = @transform_3, window_bounds = array<i64: 32, 128>}, {pipeline_mode = #tpu.pipeline_mode<synchronous>, transform_indices = @transform_4, window_bounds = array<i64: 1, 128>}, {transform_indices = @transform_5, window_bounds = array<i64: 4, 8, 8>}, {transform_indices = @transform_6, window_bounds = array<i64: 4, 256>}]} {
    %c0 = arith.constant 0 : index
    %c0_0 = arith.constant 0 : index
    %c0_1 = arith.constant 0 : index
    %0 = vector.load %arg1[%c0, %c0_0, %c0_1] : memref<4x8x8xf32, #tpu.memory_space<vmem>>, vector<4x8x8xf32>
    %c0_2 = arith.constant 0 : index
    %c0_3 = arith.constant 0 : index
    %1 = vector.load %arg2[%c0_2, %c0_3] : memref<8x1xf32, #tpu.memory_space<vmem>>, vector<8x1xf32>
    %2 = vector.shape_cast %1 : vector<8x1xf32> to vector<1x8x1xf32>
    %3 = vector.broadcast %2 : vector<1x8x1xf32> to vector<4x8x8xf32>
    %4 = arith.mulf %0, %3 : vector<4x8x8xf32>
    %cst = arith.constant dense<0.000000e+00> : vector<4x8xf32>
    %5 = vector.multi_reduction <add>, %4, %cst [1] : vector<4x8x8xf32> to vector<4x8xf32>
    %cst_4 = arith.constant dense<0xFF800000> : vector<4xf32>
    %6 = vector.multi_reduction <maximumf>, %5, %cst_4 [1] : vector<4x8xf32> to vector<4xf32>
    %7 = vector.shape_cast %6 : vector<4xf32> to vector<4x1xf32>
    %8 = vector.broadcast %7 : vector<4x1xf32> to vector<4x8xf32>
    %9 = arith.subf %5, %8 : vector<4x8xf32>
    %10 = math.exp %9 : vector<4x8xf32>
    %cst_5 = arith.constant dense<0.000000e+00> : vector<4xf32>
    %11 = vector.multi_reduction <add>, %10, %cst_5 [1] : vector<4x8xf32> to vector<4xf32>
    %12 = vector.shape_cast %11 : vector<4xf32> to vector<4x1xf32>
    %13 = vector.broadcast %12 : vector<4x1xf32> to vector<4x8xf32>
    %14 = arith.divf %10, %13 : vector<4x8xf32>
    %15 = vector.shape_cast %14 : vector<4x8xf32> to vector<4x1x8xf32>
    %16 = vector.broadcast %15 : vector<4x1x8xf32> to vector<4x8x8xf32>
    %17 = arith.mulf %0, %16 : vector<4x8x8xf32>
    %c0_6 = arith.constant 0 : index
    %c0_7 = arith.constant 0 : index
    %c0_8 = arith.constant 0 : index
    %18 = vector.load %arg6[%c0_6, %c0_7, %c0_8] : memref<4x8x8xf32, #tpu.memory_space<vmem>>, vector<4x8x8xf32>
    tpu.vector_store %arg6[%c0_6, %c0_7, %c0_8], %17 {strides = array<i32>} : memref<4x8x8xf32, #tpu.memory_space<vmem>>, vector<4x8x8xf32>,
    %19 = vector.shape_cast %17 : vector<4x8x8xf32> to vector<32x8xf32>
    %c0_9 = arith.constant 0 : index
    %c0_10 = arith.constant 0 : index
    %20 = vector.load %arg3[%c0_9, %c0_10] : memref<8x128xf32, #tpu.memory_space<vmem>>, vector<8x128xf32>
    %cst_11 = arith.constant dense<0.000000e+00> : vector<32x128xf32>
    %21 = tpu.matmul %19, %20, %cst_11 {dimension_numbers = #tpu.dot_dimension_numbers<[1], [0], [0], [1], [0, 0, 1, 1], [], []>} : vector<32x8xf32>, vector<8x128xf32>, vector<32x128xf32> -> vector<32x128xf32>
    %c0_12 = arith.constant 0 : index
    %c0_13 = arith.constant 0 : index
    %22 = vector.load %arg5[%c0_12, %c0_13] : memref<1x128xf32, #tpu.memory_space<vmem>>, vector<1x128xf32>
    %23 = vector.broadcast %22 : vector<1x128xf32> to vector<32x128xf32>
    %24 = arith.addf %21, %23 : vector<32x128xf32>
    %25 = vector.shape_cast %24 : vector<32x128xf32> to vector<4x8x128xf32>
    %c0_14 = arith.constant 0 : index
    %c0_15 = arith.constant 0 : index
    %c0_16 = arith.constant 0 : index
    %26 = vector.load %arg8[%c0_14, %c0_15, %c0_16] : memref<4x8x128xf32, #tpu.memory_space<vmem>>, vector<4x8x128xf32>
    tpu.vector_store %arg8[%c0_14, %c0_15, %c0_16], %25 {strides = array<i32>} : memref<4x8x128xf32, #tpu.memory_space<vmem>>, vector<4x8x128xf32>,
    %c0_17 = arith.constant 0 : index
    %c0_18 = arith.constant 0 : index
    %27 = vector.load %arg4[%c0_17, %c0_18] : memref<32x128xf32, #tpu.memory_space<vmem>>, vector<32x128xf32>
    %cst_19 = arith.constant 0.000000e+00 : f32
    %28 = vector.broadcast %cst_19 : f32 to vector<4x32xf32>
    %cst_20 = arith.constant 0.000000e+00 : f32
    %29 = vector.broadcast %cst_20 : f32 to vector<4x32xf32>
    %c0_21 = arith.constant 0 : index
    %c0_22 = arith.constant 0 : index
    %c0_23 = arith.constant 0 : index
    %30 = vector.load %arg8[%c0_21, %c0_22, %c0_23] : memref<4x8x128xf32, #tpu.memory_space<vmem>>, vector<4x1x128xf32>
    %31 = vector.shape_cast %30 : vector<4x1x128xf32> to vector<4x128xf32>
    %cst_24 = arith.constant dense<0.000000e+00> : vector<4x128xf32>
    %32 = tpu.matmul %28, %27, %cst_24 {dimension_numbers = #tpu.dot_dimension_numbers<[1], [0], [0], [1], [0, 0, 1, 1], [], []>} : vector<4x32xf32>, vector<32x128xf32>, vector<4x128xf32> -> vector<4x128xf32>
    %33 = arith.addf %31, %32 : vector<4x128xf32>
    %34 = arith.negf %33 : vector<4x128xf32>
    %35 = math.exp %34 : vector<4x128xf32>
    %cst_25 = arith.constant 1.000000e+00 : f32
    %36 = vector.broadcast %cst_25 : f32 to vector<4x128xf32>
    %37 = arith.addf %36, %35 : vector<4x128xf32>
    %38 = arith.divf %36, %37 : vector<4x128xf32>
    %39 = vector.extract_strided_slice %38 {offsets = [0, 0], sizes = [4, 32], strides = [1, 1]} : vector<4x128xf32> to vector<4x32xf32>
    %40 = vector.extract_strided_slice %38 {offsets = [0, 32], sizes = [4, 32], strides = [1, 1]} : vector<4x128xf32> to vector<4x32xf32>
    %41 = vector.extract_strided_slice %38 {offsets = [0, 64], sizes = [4, 32], strides = [1, 1]} : vector<4x128xf32> to vector<4x32xf32>
    %cst_26 = arith.constant 2.000000e+00 : f32
    %42 = vector.broadcast %cst_26 : f32 to vector<4x32xf32>
    %43 = arith.mulf %42, %41 : vector<4x32xf32>
    %cst_27 = arith.constant 1.000000e+00 : f32
    %44 = vector.broadcast %cst_27 : f32 to vector<4x32xf32>
    %45 = arith.subf %43, %44 : vector<4x32xf32>
    %46 = vector.extract_strided_slice %38 {offsets = [0, 96], sizes = [4, 32], strides = [1, 1]} : vector<4x128xf32> to vector<4x32xf32>
    %47 = arith.mulf %40, %29 : vector<4x32xf32>
    %48 = arith.mulf %39, %45 : vector<4x32xf32>
    %49 = arith.addf %47, %48 : vector<4x32xf32>
    %50 = math.tanh %49 : vector<4x32xf32>
    %51 = arith.mulf %46, %50 : vector<4x32xf32>
    %c0_28 = arith.constant 0 : index
    %c0_29 = arith.constant 0 : index
    %52 = vector.load %arg7[%c0_28, %c0_29] : memref<4x256xf32, #tpu.memory_space<vmem>>, vector<4x32xf32>
    tpu.vector_store %arg7[%c0_28, %c0_29], %51 {strides = array<i32>} : memref<4x256xf32, #tpu.memory_space<vmem>>, vector<4x32xf32>,
    %c0_30 = arith.constant 0 : index
    %c1 = arith.constant 1 : index
    %c0_31 = arith.constant 0 : index
    %53 = vector.load %arg8[%c0_30, %c1, %c0_31] : memref<4x8x128xf32, #tpu.memory_space<vmem>>, vector<4x1x128xf32>
    %54 = vector.shape_cast %53 : vector<4x1x128xf32> to vector<4x128xf32>
    %cst_32 = arith.constant dense<0.000000e+00> : vector<4x128xf32>
    %55 = tpu.matmul %51, %27, %cst_32 {dimension_numbers = #tpu.dot_dimension_numbers<[1], [0], [0], [1], [0, 0, 1, 1], [], []>} : vector<4x32xf32>, vector<32x128xf32>, vector<4x128xf32> -> vector<4x128xf32>
    %56 = arith.addf %54, %55 : vector<4x128xf32>
    %57 = arith.negf %56 : vector<4x128xf32>
    %58 = math.exp %57 : vector<4x128xf32>
    %cst_33 = arith.constant 1.000000e+00 : f32
    %59 = vector.broadcast %cst_33 : f32 to vector<4x128xf32>
    %60 = arith.addf %59, %58 : vector<4x128xf32>
    %61 = arith.divf %59, %60 : vector<4x128xf32>
    %62 = vector.extract_strided_slice %61 {offsets = [0, 0], sizes = [4, 32], strides = [1, 1]} : vector<4x128xf32> to vector<4x32xf32>
    %63 = vector.extract_strided_slice %61 {offsets = [0, 32], sizes = [4, 32], strides = [1, 1]} : vector<4x128xf32> to vector<4x32xf32>
    %64 = vector.extract_strided_slice %61 {offsets = [0, 64], sizes = [4, 32], strides = [1, 1]} : vector<4x128xf32> to vector<4x32xf32>
    %cst_34 = arith.constant 2.000000e+00 : f32
    %65 = vector.broadcast %cst_34 : f32 to vector<4x32xf32>
    %66 = arith.mulf %65, %64 : vector<4x32xf32>
    %cst_35 = arith.constant 1.000000e+00 : f32
    %67 = vector.broadcast %cst_35 : f32 to vector<4x32xf32>
    %68 = arith.subf %66, %67 : vector<4x32xf32>
    %69 = vector.extract_strided_slice %61 {offsets = [0, 96], sizes = [4, 32], strides = [1, 1]} : vector<4x128xf32> to vector<4x32xf32>
    %70 = arith.mulf %63, %49 : vector<4x32xf32>
    %71 = arith.mulf %62, %68 : vector<4x32xf32>
    %72 = arith.addf %70, %71 : vector<4x32xf32>
    %73 = math.tanh %72 : vector<4x32xf32>
    %74 = arith.mulf %69, %73 : vector<4x32xf32>
    %c0_36 = arith.constant 0 : index
    %c32 = arith.constant 32 : index
    %75 = vector.load %arg7[%c0_36, %c32] : memref<4x256xf32, #tpu.memory_space<vmem>>, vector<4x32xf32>
    tpu.vector_store %arg7[%c0_36, %c32], %74 {strides = array<i32>} : memref<4x256xf32, #tpu.memory_space<vmem>>, vector<4x32xf32>,
    %c0_37 = arith.constant 0 : index
    %c2 = arith.constant 2 : index
    %c0_38 = arith.constant 0 : index
    %76 = vector.load %arg8[%c0_37, %c2, %c0_38] : memref<4x8x128xf32, #tpu.memory_space<vmem>>, vector<4x1x128xf32>
    %77 = vector.shape_cast %76 : vector<4x1x128xf32> to vector<4x128xf32>
    %cst_39 = arith.constant dense<0.000000e+00> : vector<4x128xf32>
    %78 = tpu.matmul %74, %27, %cst_39 {dimension_numbers = #tpu.dot_dimension_numbers<[1], [0], [0], [1], [0, 0, 1, 1], [], []>} : vector<4x32xf32>, vector<32x128xf32>, vector<4x128xf32> -> vector<4x128xf32>
    %79 = arith.addf %77, %78 : vector<4x128xf32>
    %80 = arith.negf %79 : vector<4x128xf32>
    %81 = math.exp %80 : vector<4x128xf32>
    %cst_40 = arith.constant 1.000000e+00 : f32
    %82 = vector.broadcast %cst_40 : f32 to vector<4x128xf32>
    %83 = arith.addf %82, %81 : vector<4x128xf32>
    %84 = arith.divf %82, %83 : vector<4x128xf32>
    %85 = vector.extract_strided_slice %84 {offsets = [0, 0], sizes = [4, 32], strides = [1, 1]} : vector<4x128xf32> to vector<4x32xf32>
    %86 = vector.extract_strided_slice %84 {offsets = [0, 32], sizes = [4, 32], strides = [1, 1]} : vector<4x128xf32> to vector<4x32xf32>
    %87 = vector.extract_strided_slice %84 {offsets = [0, 64], sizes = [4, 32], strides = [1, 1]} : vector<4x128xf32> to vector<4x32xf32>
    %cst_41 = arith.constant 2.000000e+00 : f32
    %88 = vector.broadcast %cst_41 : f32 to vector<4x32xf32>
    %89 = arith.mulf %88, %87 : vector<4x32xf32>
    %cst_42 = arith.constant 1.000000e+00 : f32
    %90 = vector.broadcast %cst_42 : f32 to vector<4x32xf32>
    %91 = arith.subf %89, %90 : vector<4x32xf32>
    %92 = vector.extract_strided_slice %84 {offsets = [0, 96], sizes = [4, 32], strides = [1, 1]} : vector<4x128xf32> to vector<4x32xf32>
    %93 = arith.mulf %86, %72 : vector<4x32xf32>
    %94 = arith.mulf %85, %91 : vector<4x32xf32>
    %95 = arith.addf %93, %94 : vector<4x32xf32>
    %96 = math.tanh %95 : vector<4x32xf32>
    %97 = arith.mulf %92, %96 : vector<4x32xf32>
    %c0_43 = arith.constant 0 : index
    %c64 = arith.constant 64 : index
    %98 = vector.load %arg7[%c0_43, %c64] : memref<4x256xf32, #tpu.memory_space<vmem>>, vector<4x32xf32>
    tpu.vector_store %arg7[%c0_43, %c64], %97 {strides = array<i32>} : memref<4x256xf32, #tpu.memory_space<vmem>>, vector<4x32xf32>,
    %c0_44 = arith.constant 0 : index
    %c3 = arith.constant 3 : index
    %c0_45 = arith.constant 0 : index
    %99 = vector.load %arg8[%c0_44, %c3, %c0_45] : memref<4x8x128xf32, #tpu.memory_space<vmem>>, vector<4x1x128xf32>
    %100 = vector.shape_cast %99 : vector<4x1x128xf32> to vector<4x128xf32>
    %cst_46 = arith.constant dense<0.000000e+00> : vector<4x128xf32>
    %101 = tpu.matmul %97, %27, %cst_46 {dimension_numbers = #tpu.dot_dimension_numbers<[1], [0], [0], [1], [0, 0, 1, 1], [], []>} : vector<4x32xf32>, vector<32x128xf32>, vector<4x128xf32> -> vector<4x128xf32>
    %102 = arith.addf %100, %101 : vector<4x128xf32>
    %103 = arith.negf %102 : vector<4x128xf32>
    %104 = math.exp %103 : vector<4x128xf32>
    %cst_47 = arith.constant 1.000000e+00 : f32
    %105 = vector.broadcast %cst_47 : f32 to vector<4x128xf32>
    %106 = arith.addf %105, %104 : vector<4x128xf32>
    %107 = arith.divf %105, %106 : vector<4x128xf32>
    %108 = vector.extract_strided_slice %107 {offsets = [0, 0], sizes = [4, 32], strides = [1, 1]} : vector<4x128xf32> to vector<4x32xf32>
    %109 = vector.extract_strided_slice %107 {offsets = [0, 32], sizes = [4, 32], strides = [1, 1]} : vector<4x128xf32> to vector<4x32xf32>
    %110 = vector.extract_strided_slice %107 {offsets = [0, 64], sizes = [4, 32], strides = [1, 1]} : vector<4x128xf32> to vector<4x32xf32>
    %cst_48 = arith.constant 2.000000e+00 : f32
    %111 = vector.broadcast %cst_48 : f32 to vector<4x32xf32>
    %112 = arith.mulf %111, %110 : vector<4x32xf32>
    %cst_49 = arith.constant 1.000000e+00 : f32
    %113 = vector.broadcast %cst_49 : f32 to vector<4x32xf32>
    %114 = arith.subf %112, %113 : vector<4x32xf32>
    %115 = vector.extract_strided_slice %107 {offsets = [0, 96], sizes = [4, 32], strides = [1, 1]} : vector<4x128xf32> to vector<4x32xf32>
    %116 = arith.mulf %109, %95 : vector<4x32xf32>
    %117 = arith.mulf %108, %114 : vector<4x32xf32>
    %118 = arith.addf %116, %117 : vector<4x32xf32>
    %119 = math.tanh %118 : vector<4x32xf32>
    %120 = arith.mulf %115, %119 : vector<4x32xf32>
    %c0_50 = arith.constant 0 : index
    %c96 = arith.constant 96 : index
    %121 = vector.load %arg7[%c0_50, %c96] : memref<4x256xf32, #tpu.memory_space<vmem>>, vector<4x32xf32>
    tpu.vector_store %arg7[%c0_50, %c96], %120 {strides = array<i32>} : memref<4x256xf32, #tpu.memory_space<vmem>>, vector<4x32xf32>,
    %c0_51 = arith.constant 0 : index
    %c4 = arith.constant 4 : index
    %c0_52 = arith.constant 0 : index
    %122 = vector.load %arg8[%c0_51, %c4, %c0_52] : memref<4x8x128xf32, #tpu.memory_space<vmem>>, vector<4x1x128xf32>
    %123 = vector.shape_cast %122 : vector<4x1x128xf32> to vector<4x128xf32>
    %cst_53 = arith.constant dense<0.000000e+00> : vector<4x128xf32>
    %124 = tpu.matmul %120, %27, %cst_53 {dimension_numbers = #tpu.dot_dimension_numbers<[1], [0], [0], [1], [0, 0, 1, 1], [], []>} : vector<4x32xf32>, vector<32x128xf32>, vector<4x128xf32> -> vector<4x128xf32>
    %125 = arith.addf %123, %124 : vector<4x128xf32>
    %126 = arith.negf %125 : vector<4x128xf32>
    %127 = math.exp %126 : vector<4x128xf32>
    %cst_54 = arith.constant 1.000000e+00 : f32
    %128 = vector.broadcast %cst_54 : f32 to vector<4x128xf32>
    %129 = arith.addf %128, %127 : vector<4x128xf32>
    %130 = arith.divf %128, %129 : vector<4x128xf32>
    %131 = vector.extract_strided_slice %130 {offsets = [0, 0], sizes = [4, 32], strides = [1, 1]} : vector<4x128xf32> to vector<4x32xf32>
    %132 = vector.extract_strided_slice %130 {offsets = [0, 32], sizes = [4, 32], strides = [1, 1]} : vector<4x128xf32> to vector<4x32xf32>
    %133 = vector.extract_strided_slice %130 {offsets = [0, 64], sizes = [4, 32], strides = [1, 1]} : vector<4x128xf32> to vector<4x32xf32>
    %cst_55 = arith.constant 2.000000e+00 : f32
    %134 = vector.broadcast %cst_55 : f32 to vector<4x32xf32>
    %135 = arith.mulf %134, %133 : vector<4x32xf32>
    %cst_56 = arith.constant 1.000000e+00 : f32
    %136 = vector.broadcast %cst_56 : f32 to vector<4x32xf32>
    %137 = arith.subf %135, %136 : vector<4x32xf32>
    %138 = vector.extract_strided_slice %130 {offsets = [0, 96], sizes = [4, 32], strides = [1, 1]} : vector<4x128xf32> to vector<4x32xf32>
    %139 = arith.mulf %132, %118 : vector<4x32xf32>
    %140 = arith.mulf %131, %137 : vector<4x32xf32>
    %141 = arith.addf %139, %140 : vector<4x32xf32>
    %142 = math.tanh %141 : vector<4x32xf32>
    %143 = arith.mulf %138, %142 : vector<4x32xf32>
    %c0_57 = arith.constant 0 : index
    %c128 = arith.constant 128 : index
    %144 = vector.load %arg7[%c0_57, %c128] : memref<4x256xf32, #tpu.memory_space<vmem>>, vector<4x32xf32>
    tpu.vector_store %arg7[%c0_57, %c128], %143 {strides = array<i32>} : memref<4x256xf32, #tpu.memory_space<vmem>>, vector<4x32xf32>,
    %c0_58 = arith.constant 0 : index
    %c5 = arith.constant 5 : index
    %c0_59 = arith.constant 0 : index
    %145 = vector.load %arg8[%c0_58, %c5, %c0_59] : memref<4x8x128xf32, #tpu.memory_space<vmem>>, vector<4x1x128xf32>
    %146 = vector.shape_cast %145 : vector<4x1x128xf32> to vector<4x128xf32>
    %cst_60 = arith.constant dense<0.000000e+00> : vector<4x128xf32>
    %147 = tpu.matmul %143, %27, %cst_60 {dimension_numbers = #tpu.dot_dimension_numbers<[1], [0], [0], [1], [0, 0, 1, 1], [], []>} : vector<4x32xf32>, vector<32x128xf32>, vector<4x128xf32> -> vector<4x128xf32>
    %148 = arith.addf %146, %147 : vector<4x128xf32>
    %149 = arith.negf %148 : vector<4x128xf32>
    %150 = math.exp %149 : vector<4x128xf32>
    %cst_61 = arith.constant 1.000000e+00 : f32
    %151 = vector.broadcast %cst_61 : f32 to vector<4x128xf32>
    %152 = arith.addf %151, %150 : vector<4x128xf32>
    %153 = arith.divf %151, %152 : vector<4x128xf32>
    %154 = vector.extract_strided_slice %153 {offsets = [0, 0], sizes = [4, 32], strides = [1, 1]} : vector<4x128xf32> to vector<4x32xf32>
    %155 = vector.extract_strided_slice %153 {offsets = [0, 32], sizes = [4, 32], strides = [1, 1]} : vector<4x128xf32> to vector<4x32xf32>
    %156 = vector.extract_strided_slice %153 {offsets = [0, 64], sizes = [4, 32], strides = [1, 1]} : vector<4x128xf32> to vector<4x32xf32>
    %cst_62 = arith.constant 2.000000e+00 : f32
    %157 = vector.broadcast %cst_62 : f32 to vector<4x32xf32>
    %158 = arith.mulf %157, %156 : vector<4x32xf32>
    %cst_63 = arith.constant 1.000000e+00 : f32
    %159 = vector.broadcast %cst_63 : f32 to vector<4x32xf32>
    %160 = arith.subf %158, %159 : vector<4x32xf32>
    %161 = vector.extract_strided_slice %153 {offsets = [0, 96], sizes = [4, 32], strides = [1, 1]} : vector<4x128xf32> to vector<4x32xf32>
    %162 = arith.mulf %155, %141 : vector<4x32xf32>
    %163 = arith.mulf %154, %160 : vector<4x32xf32>
    %164 = arith.addf %162, %163 : vector<4x32xf32>
    %165 = math.tanh %164 : vector<4x32xf32>
    %166 = arith.mulf %161, %165 : vector<4x32xf32>
    %c0_64 = arith.constant 0 : index
    %c160 = arith.constant 160 : index
    %167 = vector.load %arg7[%c0_64, %c160] : memref<4x256xf32, #tpu.memory_space<vmem>>, vector<4x32xf32>
    tpu.vector_store %arg7[%c0_64, %c160], %166 {strides = array<i32>} : memref<4x256xf32, #tpu.memory_space<vmem>>, vector<4x32xf32>,
    %c0_65 = arith.constant 0 : index
    %c6 = arith.constant 6 : index
    %c0_66 = arith.constant 0 : index
    %168 = vector.load %arg8[%c0_65, %c6, %c0_66] : memref<4x8x128xf32, #tpu.memory_space<vmem>>, vector<4x1x128xf32>
    %169 = vector.shape_cast %168 : vector<4x1x128xf32> to vector<4x128xf32>
    %cst_67 = arith.constant dense<0.000000e+00> : vector<4x128xf32>
    %170 = tpu.matmul %166, %27, %cst_67 {dimension_numbers = #tpu.dot_dimension_numbers<[1], [0], [0], [1], [0, 0, 1, 1], [], []>} : vector<4x32xf32>, vector<32x128xf32>, vector<4x128xf32> -> vector<4x128xf32>
    %171 = arith.addf %169, %170 : vector<4x128xf32>
    %172 = arith.negf %171 : vector<4x128xf32>
    %173 = math.exp %172 : vector<4x128xf32>
    %cst_68 = arith.constant 1.000000e+00 : f32
    %174 = vector.broadcast %cst_68 : f32 to vector<4x128xf32>
    %175 = arith.addf %174, %173 : vector<4x128xf32>
    %176 = arith.divf %174, %175 : vector<4x128xf32>
    %177 = vector.extract_strided_slice %176 {offsets = [0, 0], sizes = [4, 32], strides = [1, 1]} : vector<4x128xf32> to vector<4x32xf32>
    %178 = vector.extract_strided_slice %176 {offsets = [0, 32], sizes = [4, 32], strides = [1, 1]} : vector<4x128xf32> to vector<4x32xf32>
    %179 = vector.extract_strided_slice %176 {offsets = [0, 64], sizes = [4, 32], strides = [1, 1]} : vector<4x128xf32> to vector<4x32xf32>
    %cst_69 = arith.constant 2.000000e+00 : f32
    %180 = vector.broadcast %cst_69 : f32 to vector<4x32xf32>
    %181 = arith.mulf %180, %179 : vector<4x32xf32>
    %cst_70 = arith.constant 1.000000e+00 : f32
    %182 = vector.broadcast %cst_70 : f32 to vector<4x32xf32>
    %183 = arith.subf %181, %182 : vector<4x32xf32>
    %184 = vector.extract_strided_slice %176 {offsets = [0, 96], sizes = [4, 32], strides = [1, 1]} : vector<4x128xf32> to vector<4x32xf32>
    %185 = arith.mulf %178, %164 : vector<4x32xf32>
    %186 = arith.mulf %177, %183 : vector<4x32xf32>
    %187 = arith.addf %185, %186 : vector<4x32xf32>
    %188 = math.tanh %187 : vector<4x32xf32>
    %189 = arith.mulf %184, %188 : vector<4x32xf32>
    %c0_71 = arith.constant 0 : index
    %c192 = arith.constant 192 : index
    %190 = vector.load %arg7[%c0_71, %c192] : memref<4x256xf32, #tpu.memory_space<vmem>>, vector<4x32xf32>
    tpu.vector_store %arg7[%c0_71, %c192], %189 {strides = array<i32>} : memref<4x256xf32, #tpu.memory_space<vmem>>, vector<4x32xf32>,
    %c0_72 = arith.constant 0 : index
    %c7 = arith.constant 7 : index
    %c0_73 = arith.constant 0 : index
    %191 = vector.load %arg8[%c0_72, %c7, %c0_73] : memref<4x8x128xf32, #tpu.memory_space<vmem>>, vector<4x1x128xf32>
    %192 = vector.shape_cast %191 : vector<4x1x128xf32> to vector<4x128xf32>
    %cst_74 = arith.constant dense<0.000000e+00> : vector<4x128xf32>
    %193 = tpu.matmul %189, %27, %cst_74 {dimension_numbers = #tpu.dot_dimension_numbers<[1], [0], [0], [1], [0, 0, 1, 1], [], []>} : vector<4x32xf32>, vector<32x128xf32>, vector<4x128xf32> -> vector<4x128xf32>
    %194 = arith.addf %192, %193 : vector<4x128xf32>
    %195 = arith.negf %194 : vector<4x128xf32>
    %196 = math.exp %195 : vector<4x128xf32>
    %cst_75 = arith.constant 1.000000e+00 : f32
    %197 = vector.broadcast %cst_75 : f32 to vector<4x128xf32>
    %198 = arith.addf %197, %196 : vector<4x128xf32>
    %199 = arith.divf %197, %198 : vector<4x128xf32>
    %200 = vector.extract_strided_slice %199 {offsets = [0, 0], sizes = [4, 32], strides = [1, 1]} : vector<4x128xf32> to vector<4x32xf32>
    %201 = vector.extract_strided_slice %199 {offsets = [0, 32], sizes = [4, 32], strides = [1, 1]} : vector<4x128xf32> to vector<4x32xf32>
    %202 = vector.extract_strided_slice %199 {offsets = [0, 64], sizes = [4, 32], strides = [1, 1]} : vector<4x128xf32> to vector<4x32xf32>
    %cst_76 = arith.constant 2.000000e+00 : f32
    %203 = vector.broadcast %cst_76 : f32 to vector<4x32xf32>
    %204 = arith.mulf %203, %202 : vector<4x32xf32>
    %cst_77 = arith.constant 1.000000e+00 : f32
    %205 = vector.broadcast %cst_77 : f32 to vector<4x32xf32>
    %206 = arith.subf %204, %205 : vector<4x32xf32>
    %207 = vector.extract_strided_slice %199 {offsets = [0, 96], sizes = [4, 32], strides = [1, 1]} : vector<4x128xf32> to vector<4x32xf32>
    %208 = arith.mulf %201, %187 : vector<4x32xf32>
    %209 = arith.mulf %200, %206 : vector<4x32xf32>
    %210 = arith.addf %208, %209 : vector<4x32xf32>
    %211 = math.tanh %210 : vector<4x32xf32>
    %212 = arith.mulf %207, %211 : vector<4x32xf32>
    %c0_78 = arith.constant 0 : index
    %c224 = arith.constant 224 : index
    %213 = vector.load %arg7[%c0_78, %c224] : memref<4x256xf32, #tpu.memory_space<vmem>>, vector<4x32xf32>
    tpu.vector_store %arg7[%c0_78, %c224], %212 {strides = array<i32>} : memref<4x256xf32, #tpu.memory_space<vmem>>, vector<4x32xf32>,
    return
  }
  func.func @transform_0(%arg0: i32) -> (i32, i32, i32) {
    %c0_i32 = arith.constant 0 : i32
    %c0_i32_0 = arith.constant 0 : i32
    %c0_i32_1 = arith.constant 0 : i32
    return %arg0, %c0_i32, %c0_i32_0 : i32, i32, i32
  }
  func.func @transform_1(%arg0: i32) -> (i32, i32) {
    %c0_i32 = arith.constant 0 : i32
    %c0_i32_0 = arith.constant 0 : i32
    %c0_i32_1 = arith.constant 0 : i32
    return %c0_i32, %c0_i32_0 : i32, i32
  }
  func.func @transform_2(%arg0: i32) -> (i32, i32) {
    %c0_i32 = arith.constant 0 : i32
    %c0_i32_0 = arith.constant 0 : i32
    %c0_i32_1 = arith.constant 0 : i32
    return %c0_i32, %c0_i32_0 : i32, i32
  }
  func.func @transform_3(%arg0: i32) -> (i32, i32) {
    %c0_i32 = arith.constant 0 : i32
    %c0_i32_0 = arith.constant 0 : i32
    %c0_i32_1 = arith.constant 0 : i32
    return %c0_i32, %c0_i32_0 : i32, i32
  }
  func.func @transform_4(%arg0: i32) -> (i32, i32) {
    %c0_i32 = arith.constant 0 : i32
    %c0_i32_0 = arith.constant 0 : i32
    %c0_i32_1 = arith.constant 0 : i32
    return %c0_i32, %c0_i32_0 : i32, i32
  }
  func.func @transform_5(%arg0: i32) -> (i32, i32, i32) {
    %c0_i32 = arith.constant 0 : i32
    %c0_i32_0 = arith.constant 0 : i32
    %c0_i32_1 = arith.constant 0 : i32
    return %arg0, %c0_i32, %c0_i32_0 : i32, i32, i32
  }
  func.func @transform_6(%arg0: i32) -> (i32, i32) {
    %c0_i32 = arith.constant 0 : i32
    %c0_i32_0 = arith.constant 0 : i32
    return %arg0, %c0_i32 : i32, i32
  }
}

</mosaic_0001>

<bundles_post_ra>
// kernel: tpu_custom_call.1
= control target key start
LH: loop header
LB: loop body
LE: loop exit
PB: predicated region body
PF: predicated region fallthrough
CT: control target
= control target key end

     0   :  { %12 = vsyncpa [#allocation4], 0  ;;  %s3122_s0 = inlined_call_operand.hbm [shape: f32[4,8,8], index: 0, kind: input, shape index: {}]   ;;  %s3123_s1 = inlined_call_operand.vmem [shape: f32[8,1], index: 1, kind: input, shape index: {}]   ;;  %s3124_s2 = inlined_call_operand.vmem [shape: f32[8,128], index: 2, kind: input, shape index: {}]   ;;  %s3125_s3 = inlined_call_operand.hbm [shape: f32[32,128], index: 3, kind: input, shape index: {}]   ;;  %s3126_s4 = inlined_call_operand.vmem [shape: f32[1,128], index: 4, kind: input, shape index: {}]   ;;  %s3127_s5 = inlined_call_operand.hbm [shape: f32[4,8,8], index: 5, kind: output, shape index: {0}]   ;;  %s3128_s6 = inlined_call_operand.hbm [shape: f32[4,256], index: 6, kind: output, shape index: {1}]  }
   0x1   :  { %13 = vsyncpa [#allocation7], 0 }
   0x2   :  { %14 = vsyncpa [#allocation5], 0 }
   0x3   :  { %15 = vsyncpa [#allocation10], 0  ;;  %s20_s23 = sshll.u32 %s3122_s0, 4  ;;  %s2407_s24 = smov [#allocation3]   ;;  %s21_s23 = int_to_ptr.hbm [resolvable:$true] %s20_s23 }
   0x4   :  { %s22_s25 = sshll.u32 %s2407_s24, 4  ;;  %s37_s28 = sshll.u32 %s3125_s3, 4  ;;  %s23_s25 = int_to_ptr.vmem [resolvable:$true] %s22_s25  ;;  %s38_s28 = int_to_ptr.hbm [resolvable:$true] %s37_s28 }
   0x5   :  { %s2408_s29 = smov 128   ;;  %s2409_s30 = smov 8  }
   0x6   :  { %28 = dma.hbm_to_vmem [thread:$0]  %s21_s23, 512, %s23_s25, [#allocation4], %s2408_s29, %s2408_s29, %s2409_s30  }
   0x7   :  { %s2410_s7 = smov [#allocation6]  }
   0x8   :  { %s39_s8 = sshll.u32 %s2410_s7, 4  ;;  %s40_s8 = int_to_ptr.vmem [resolvable:$true] %s39_s8 }
   0x9   :  { %45 = dma.hbm_to_vmem [thread:$0]  %s38_s28, 512, %s40_s8, [#allocation7], %s2408_s29, %s2408_s29, %s2409_s30  }
   0xa   :  { %2399 = dma.done.wait [#allocation4], 512  }
   0xb   :  { %2400 = vsyncadd [#allocation4], 4294966784 }
   0xc   :  { %2401 = dma.done.wait [#allocation7], 512  }
   0xd   :  { %2402 = vsyncadd [#allocation7], 4294966784  ;;  %v2411_v0 = vmov 0   ;;  %v60_v1 = vld [vmem:[%s3123_s1] sm:$0xff]  ;;  %v2470_v3 = vld [vmem:[#allocation3 + $0x8] sm:$0xff]  ;;  %vm70_vm0 = vcmask 64512  }
   0xe   :  { %2093 = vset.pattern.permute.xlu0 %v2411_v0  ;;  %v2468_v2 = vld [vmem:[#allocation3] sm:$0xff]  ;;  %v2472_v4 = vld [vmem:[#allocation3 + $0x10] sm:$0xff]  ;;  %v2474_v5 = vld [vmem:[#allocation3 + $0x18] sm:$0xff]  ;;  %vm103_vm1 = vcmask 1041409   ;;  %vm3133_vm2 = vcmask 1042434   ;;  %vm3132_vm3 = vcmask 1043459  }
   0xf   :  { %63 = vperm.xlu0 %2093, %v60_v1   ;;  %vm110_vm4 = vcmask 60416   ;;  %s2414_s11 = smov 32   ;;  %s1977_s14 = sshll.u32 %s3127_s5, 4  ;;  %s1978_s14 = int_to_ptr.hbm [resolvable:$true] %s1977_s14 }
  0x10   :  { %s2415_s15 = smov [#allocation8]   ;;  %s2416_s5 = smov 96  }
  0x11   :  { %s1975_s16 = sshll.u32 %s2415_s15, 4  ;;  %s2417_s17 = smov [#allocation9]   ;;  %s1976_s16 = int_to_ptr.vmem [resolvable:$true] %s1975_s16 }
  0x12   :  { %s1989_s18 = sshll.u32 %s2417_s17, 4  ;;  %s1991_s21 = sshll.u32 %s3128_s6, 4  ;;  %s1990_s18 = int_to_ptr.vmem [resolvable:$true] %s1989_s18  ;;  %s1992_s21 = int_to_ptr.hbm [resolvable:$true] %s1991_s21 }
  0x81   :  { %v64_v6 = vpop.permute.xlu0 %63 }
  0x82   :  { %v66_v7 = vmul.f32 %v64_v6, %v2468_v2  ;;  %v67_v8 = vmul.f32 %v64_v6, %v2470_v3  ;;  %v68_v9 = vmul.f32 %v64_v6, %v2472_v4  ;;  %v69_v10 = vmul.f32 %v64_v6, %v2474_v5  ;;  %v228_v6 = vld [vmem:[%s3124_s2] sm:$0xff] }
  0x83   :  { %260 = vmatpush.msra.mxu0 %v228_v6 }
  0x84   :  { %v71_v11 = vsel %vm70_vm0, %v66_v7, 0.0  ;;  %v78_v12 = vsel %vm70_vm0, %v67_v8, 0.0  ;;  %v85_v13 = vsel %vm70_vm0, %v68_v9, 0.0  ;;  %v92_v14 = vsel %vm70_vm0, %v69_v10, 0.0  ;;  %v2507_v7 = vld [vmem:[#allocation6 + $0x18] sm:$0xff]  ;;  %v2509_v8 = vld [vmem:[#allocation6 + $0x10] sm:$0xff] }
  0x85   :  { %v72_v15 = vrot.slane %v71_v11, 4  ;;  %v79_v16 = vrot.slane %v78_v12, 4  ;;  %v86_v17 = vrot.slane %v85_v13, 4  ;;  %v93_v18 = vrot.slane %v92_v14, 4  ;;  %302 = vmatpush.msra.mxu1 %v2507_v7  ;;  %517 = vmatpush.msra.mxu2 %v2507_v7  ;;  %v2513_v9 = vld [vmem:[#allocation6 + $0x8] sm:$0xff] }
  0x86   :  { %729 = vmatpush.msra.mxu3 %v2507_v7 }
  0x87   :  { %v73_v19 = vadd.f32 %v72_v15, %v71_v11  ;;  %v80_v20 = vadd.f32 %v79_v16, %v78_v12  ;;  %v87_v21 = vadd.f32 %v86_v17, %v85_v13  ;;  %v94_v22 = vadd.f32 %v93_v18, %v92_v14  ;;  %303 = vmatpush.msra.mxu1 %v2509_v8  ;;  %v2522_v11 = vld [vmem:[#allocation6] sm:$0xff] }
  0x88   :  { %518 = vmatpush.msra.mxu2 %v2509_v8  ;;  %730 = vmatpush.msra.mxu3 %v2509_v8  ;;  %v2412_v15 = vmov 0.0  }
  0x89   :  { %v74_v23 = vrot.slane %v73_v19, 2  ;;  %v81_v24 = vrot.slane %v80_v20, 2  ;;  %v88_v25 = vrot.slane %v87_v21, 2  ;;  %v95_v26 = vrot.slane %v94_v22, 2  ;;  %304 = vmatpush.msra.mxu1 %v2513_v9 }
  0x8a   :  { %519 = vmatpush.msra.mxu2 %v2513_v9  ;;  %731 = vmatpush.msra.mxu3 %v2513_v9 }
  0x8b   :  { %v75_v27 = vadd.f32 %v74_v23, %v73_v19  ;;  %v82_v28 = vadd.f32 %v81_v24, %v80_v20  ;;  %v89_v29 = vadd.f32 %v88_v25, %v87_v21  ;;  %v96_v30 = vadd.f32 %v95_v26, %v94_v22  ;;  %305 = vmatpush.msra.mxu1 %v2522_v11 }
  0x8c   :  { %520 = vmatpush.msra.mxu2 %v2522_v11  ;;  %306 = vmatmul.f32.vlgmr.msra.gmra.mxu1 %v2412_v15 }
  0x8d   :  { %v76_v31 = vrot.slane %v75_v27, 1  ;;  %v83_v32 = vrot.slane %v82_v28, 1  ;;  %v90_v33 = vrot.slane %v89_v29, 1  ;;  %v97_v34 = vrot.slane %v96_v30, 1  ;;  %732 = vmatpush.msra.mxu3 %v2522_v11  ;;  %941 = vmatpush.msrb.mxu1 %v2507_v7 }
  0x8e   :  { %1151 = vmatpush.msrb.mxu2 %v2507_v7 }
  0x8f   :  { %v77_v35 = vadd.f32 %v76_v31, %v75_v27  ;;  %v84_v36 = vadd.f32 %v83_v32, %v82_v28  ;;  %v91_v37 = vadd.f32 %v90_v33, %v89_v29  ;;  %v98_v38 = vadd.f32 %v97_v34, %v96_v30  ;;  %1362 = vmatpush.msrb.mxu3 %v2507_v7 }
  0x90   :  { %942 = vmatpush.msrb.mxu1 %v2509_v8  ;;  %1152 = vmatpush.msrb.mxu2 %v2509_v8 }
  0x91   :  { %v104_v39 = vsel %vm103_vm1, %v84_v36, %v77_v35  ;;  %1363 = vmatpush.msrb.mxu3 %v2509_v8 }
  0x92   :  { %v106_v40 = vsel %vm3133_vm2, %v91_v37, %v104_v39  ;;  %943 = vmatpush.msrb.mxu1 %v2513_v9  ;;  %1153 = vmatpush.msrb.mxu2 %v2513_v9 }
  0x93   :  { %v108_v41 = vsel %vm3132_vm3, %v98_v38, %v106_v40  ;;  %1364 = vmatpush.msrb.mxu3 %v2513_v9 }
  0x94   :  { %v111_v42 = vsel %vm110_vm4, %v108_v41, -inf  ;;  %944 = vmatpush.msrb.mxu1 %v2522_v11  ;;  %1154 = vmatpush.msrb.mxu2 %v2522_v11 }
  0x95   :  { %112 = vmax.xlane.f32.xlu0 %v111_v42  ;;  %1365 = vmatpush.msrb.mxu3 %v2522_v11 }
  0x96   :  { %1573 = vmatpush.msra.mxu1 %v2507_v7 }
  0x98   :  { %1574 = vmatpush.msra.mxu1 %v2509_v8 }
  0x9a   :  { %1575 = vmatpush.msra.mxu1 %v2513_v9 }
  0x9c   :  { %1576 = vmatpush.msra.mxu1 %v2522_v11 }
 0x108   :  { %v113_v43 = vpop.xlane.xlu0 %112 }
 0x109   :  { %v115_v44 = vrot.slane %v113_v43, 1  ;;  %v116_v45 = vrot.slane %v113_v43, 2  ;;  %v117_v46 = vrot.slane %v113_v43, 3  ;;  %v122_v47 = vsub.f32 %v77_v35, %v113_v43  ;;  %v307_v15 = vpop.f32.mrf.mxu1 }
 0x10b   :  { %v123_v48 = vsub.f32 %v84_v36, %v115_v44  ;;  %v124_v49 = vsub.f32 %v91_v37, %v116_v45  ;;  %v125_v50 = vsub.f32 %v98_v38, %v117_v46  ;;  %v126_v51 = vmul.f32 1.442695, %v122_v47 }
 0x10d   :  { %v128_v52 = vmul.f32 1.442695, %v123_v48  ;;  %v130_v53 = vmul.f32 1.442695, %v124_v49  ;;  %v132_v54 = vmul.f32 1.442695, %v125_v50  ;;  %2095 = vpow2.f32 %v126_v51 }
 0x10f   :  { %2097 = vpow2.f32 %v128_v52 }
 0x110   :  { %2099 = vpow2.f32 %v130_v53 }
 0x111   :  { %2101 = vpow2.f32 %v132_v54 }
 0x113   :  { %v2488_v55 = vpop.eup %2095 }
 0x115   :  { %v2490_v56 = vpop.eup %2097 }
 0x116   :  { %v2492_v57 = vpop.eup %2099  ;;  %v138_v58 = vrot.slane %v2490_v56, 7 }
 0x117   :  { %v2495_v59 = vpop.eup %2101  ;;  %v140_v60 = vrot.slane %v2492_v57, 6 }
 0x118   :  { %v139_v61 = vsel %vm103_vm1, %v138_v58, %v2488_v55  ;;  %v142_v62 = vrot.slane %v2495_v59, 5 }
 0x119   :  { %v141_v63 = vsel %vm3133_vm2, %v140_v60, %v139_v61 }
 0x11a   :  { %v143_v0 = vsel %vm3132_vm3, %v142_v62, %v141_v63 }
 0x11b   :  { %v145_v1 = vsel %vm110_vm4, %v143_v0, 0.0 }
 0x11c   :  { %146 = vadd.xlane.f32.xlu1 %v145_v1 }
 0x18f   :  { %v147_v10 = vpop.xlane.xlu1 %146 }
 0x190   :  { %v2524_v12 = vrot.slane %v147_v10, 1  ;;  %v2526_v13 = vrot.slane %v147_v10, 2  ;;  %v2528_v14 = vrot.slane %v147_v10, 3  ;;  %2103 = vrcp.f32 %v147_v10 }
 0x191   :  { %v165_v16 = vand.u32 2147483647, %v147_v10  ;;  %v167_v18 = vand.u32 2147483648, %v147_v10  ;;  %vm161_vm5 = vweird.f32 %v147_v10 }
 0x192   :  { %2105 = vrcp.f32 %v2524_v12  ;;  %v180_v19 = vand.u32 2147483647, %v2524_v12  ;;  %v182_v22 = vand.u32 2147483648, %v2524_v12  ;;  %vm176_vm7 = vweird.f32 %v2524_v12 }
 0x193   :  { %2107 = vrcp.f32 %v2526_v13  ;;  %vm2549_vm6 = vcmp.eq.f32.partialorder %v165_v16, 8.507059e+37  ;;  %v168_v28 = vor.u32 1.1754944e-38, %v167_v18  ;;  %vm191_vm9 = vweird.f32 %v2526_v13 }
 0x194   :  { %2109 = vrcp.f32 %v2528_v14  ;;  %vm2557_vm8 = vcmp.eq.f32.partialorder %v180_v19, 8.507059e+37  ;;  %v183_v34 = vor.u32 1.1754944e-38, %v182_v22  ;;  %v195_v36 = vand.u32 2147483647, %v2526_v13 }
 0x195   :  { %v197_v37 = vand.u32 2147483648, %v2526_v13  ;;  %v210_v42 = vand.u32 2147483647, %v2528_v14  ;;  %v212_v43 = vand.u32 2147483648, %v2528_v14  ;;  %v311_v19 = vrot.slane %v307_v15, 1 }
 0x196   :  { %v2104_v17 = vpop.eup %2103  ;;  %vm196_vm4 = vcmp.eq.f32.partialorder %v195_v36, 8.507059e+37 }
 0x197   :  { %v157_v20 = vmul.f32 %v2104_v17, %v147_v10  ;;  %vm162_vm10 = vweird.f32 %v2104_v17  ;;  %v198_v51 = vor.u32 1.1754944e-38, %v197_v37  ;;  %v213_v58 = vor.u32 1.1754944e-38, %v212_v43 }
 0x198   :  { %v2106_v21 = vpop.eup %2105  ;;  %vm163_vm12 = vmor %vm161_vm5, %vm162_vm10  ;;  %vm206_vm5 = vweird.f32 %v2528_v14  ;;  %v313_v37 = vrot.slane %v307_v15, 3 }
 0x199   :  { %v2108_v23 = vpop.eup %2107  ;;  %v158_v24 = vsub.f32 1.0, %v157_v20  ;;  %v172_v26 = vmul.f32 %v2106_v21, %v2524_v12  ;;  %vm177_vm11 = vweird.f32 %v2106_v21 }
 0x19a   :  { %v2110_v27 = vpop.eup %2109  ;;  %v187_v30 = vmul.f32 %v2108_v23, %v2526_v13  ;;  %vm192_vm13 = vweird.f32 %v2108_v23  ;;  %vm178_vm15 = vmor %vm176_vm7, %vm177_vm11 }
 0x19b   :  { %v159_v31 = vmul.f32 %v2104_v17, %v158_v24  ;;  %v173_v32 = vsub.f32 1.0, %v172_v26  ;;  %v202_v33 = vmul.f32 %v2110_v27, %v2528_v14  ;;  %vm207_vm14 = vweird.f32 %v2110_v27  ;;  %vm193_vm10 = vmor %vm191_vm9, %vm192_vm13 }
 0x19c   :  { %v188_v35 = vsub.f32 1.0, %v187_v30 }
 0x19d   :  { %v160_v38 = vadd.f32 %v2104_v17, %v159_v31  ;;  %v174_v39 = vmul.f32 %v2106_v21, %v173_v32  ;;  %v203_v40 = vsub.f32 1.0, %v202_v33 }
 0x19e   :  { %v189_v41 = vmul.f32 %v2108_v23, %v188_v35 }
 0x19f   :  { %v164_v44 = vsel %vm163_vm12, %v2104_v17, %v160_v38  ;;  %v175_v45 = vadd.f32 %v2106_v21, %v174_v39  ;;  %v204_v46 = vmul.f32 %v2110_v27, %v203_v40  ;;  %vm211_vm12 = vcmp.eq.f32.partialorder %v210_v42, 8.507059e+37 }
 0x1a0   :  { %v169_v47 = vsel %vm2549_vm6, %v168_v28, %v164_v44  ;;  %v190_v48 = vadd.f32 %v2108_v23, %v189_v41  ;;  %vm208_vm6 = vmor %vm206_vm5, %vm207_vm14  ;;  %v312_v28 = vrot.slane %v307_v15, 2 }
 0x1a1   :  { %v170_v49 = vmul.f32 %v2488_v55, %v169_v47  ;;  %v179_v50 = vsel %vm178_vm15, %v2106_v21, %v175_v45  ;;  %v205_v52 = vadd.f32 %v2110_v27, %v204_v46 }
 0x1a2   :  { %v184_v53 = vsel %vm2557_vm8, %v183_v34, %v179_v50  ;;  %v194_v54 = vsel %vm193_vm10, %v2108_v23, %v190_v48 }
 0x1a3   :  { %v216_v60 = vperm.slane %v170_v49, 0  ;;  %v185_v61 = vmul.f32 %v2490_v56, %v184_v53  ;;  %v199_v62 = vsel %vm196_vm4, %v198_v51, %v194_v54  ;;  %v209_v63 = vsel %vm208_vm6, %v2110_v27, %v205_v52 }
 0x1a4   :  { %v200_v55 = vmul.f32 %v2492_v57, %v199_v62  ;;  %v214_v0 = vsel %vm211_vm12, %v213_v58, %v209_v63 }
 0x1a5   :  { %v220_v1 = vmul.f32 %v216_v60, %v2468_v2  ;;  %v217_v6 = vperm.slane %v185_v61, 0  ;;  %v215_v10 = vmul.f32 %v2495_v59, %v214_v0  ;;  %v2094_v2 = vld [vmem:[%s3126_s4] ss:$0 sm:$0xff]  ;;  %s2413_s4 = smov 64  }
 0x1a6   :  { %v218_v12 = vperm.slane %v200_v55, 0 }
 0x1a7   :  { %224 = vst.msk [vmem:[#allocation8] sm:$0xff] %vm70_vm0, %v220_v1  ;;  %2007 = vmatmul.msk.f32.vlgmr.msra.gmra.mxu0 %vm70_vm0, %v220_v1  ;;  %v221_v13 = vmul.f32 %v217_v6, %v2470_v3  ;;  %v219_v14 = vperm.slane %v215_v10, 0 }
 0x1a8   :  { %v222_v56 = vmul.f32 %v218_v12, %v2472_v4 }
 0x1a9   :  { %225 = vst.msk [vmem:[#allocation8 + $0x8] sm:$0xff] %vm70_vm0, %v221_v13  ;;  %v223_v57 = vmul.f32 %v219_v14, %v2474_v5 }
 0x1aa   :  { %226 = vst.msk [vmem:[#allocation8 + $0x10] sm:$0xff] %vm70_vm0, %v222_v56 }
 0x1ab   :  { %227 = vst.msk [vmem:[#allocation8 + $0x18] sm:$0xff] %vm70_vm0, %v223_v57 }
 0x1ac   :  { %1983 = dma.vmem_to_hbm [thread:$0]  %s1976_s16, 512, %s1978_s14, [#allocation5], %s2408_s29, %s2408_s29, %s2409_s30  }
 0x1af   :  { %2008 = vmatmul.msk.f32.gmra.mxu0 %vm70_vm0, %v221_v13 }
 0x1b7   :  { %2009 = vmatmul.msk.f32.gmra.mxu0 %vm70_vm0, %v222_v56 }
 0x1bf   :  { %2010 = vmatmul.msk.f32.gmra.mxu0 %vm70_vm0, %v223_v57 }
 0x224   :  { %v262_v3 = vpop.f32.mrf.mxu0 }
 0x225   :  { %v263_v4 = vadd.f32 %v2094_v2, %v262_v3 }
 0x227   :  { %274 = vst [vmem:[#allocation2] sm:$0xff] %v263_v4 }
 0x22c   :  { %v265_v59 = vpop.f32.mrf.mxu0 }
 0x22d   :  { %v266_v5 = vadd.f32 %v2094_v2, %v265_v59 }
 0x22e   :  { %v282_v16 = vld [vmem:[#allocation2] sm:$0x1] }
 0x22f   :  { %275 = vst [vmem:[#allocation2 + $0x8] sm:$0xff] %v266_v5  ;;  %v318_v17 = vadd.f32 %v307_v15, %v282_v16 }
 0x231   :  { %v2011_v18 = vmul.f32 -1.442695, %v318_v17 }
 0x233   :  { %2111 = vpow2.f32 %v2011_v18 }
 0x234   :  { %v268_v20 = vpop.f32.mrf.mxu0 }
 0x235   :  { %v269_v21 = vadd.f32 %v2094_v2, %v268_v20 }
 0x236   :  { %v283_v22 = vld [vmem:[#allocation2 + $0x8] sm:$0x1] }
 0x237   :  { %v319_v23 = vadd.f32 %v311_v19, %v283_v22  ;;  %276 = vst [vmem:[#allocation2 + $0x10] sm:$0xff] %v269_v21 }
 0x239   :  { %v2112_v24 = vpop.eup %2111  ;;  %v2012_v25 = vmul.f32 -1.442695, %v319_v23 }
 0x23a   :  { %v334_v26 = vadd.f32 1.0, %v2112_v24 }
 0x23b   :  { %2113 = vpow2.f32 %v2012_v25 }
 0x23c   :  { %2115 = vrcp.f32 %v334_v26  ;;  %v271_v27 = vpop.f32.mrf.mxu0  ;;  %v349_v39 = vand.u32 2147483648, %v334_v26  ;;  %v347_v42 = vand.u32 2147483647, %v334_v26  ;;  %vm343_vm7 = vweird.f32 %v334_v26 }
 0x23d   :  { %v272_v29 = vadd.f32 %v2094_v2, %v271_v27 }
 0x23e   :  { %v284_v30 = vld [vmem:[#allocation2 + $0x10] sm:$0x1]  ;;  %v350_v48 = vor.u32 1.1754944e-38, %v349_v39  ;;  %vm348_vm9 = vcmp.eq.f32.partialorder %v347_v42, 8.507059e+37 }
 0x23f   :  { %277 = vst [vmem:[#allocation2 + $0x18] sm:$0xff] %v272_v29  ;;  %v320_v31 = vadd.f32 %v312_v28, %v284_v30 }
 0x241   :  { %v2114_v32 = vpop.eup %2113  ;;  %v2013_v33 = vmul.f32 -1.442695, %v320_v31 }
 0x242   :  { %v2116_v34 = vpop.eup %2115  ;;  %v335_v35 = vadd.f32 1.0, %v2114_v32 }
 0x243   :  { %v339_v36 = vmul.f32 %v2116_v34, %v334_v26  ;;  %2117 = vpow2.f32 %v2013_v33  ;;  %vm344_vm0 = vweird.f32 %v2116_v34 }
 0x244   :  { %2119 = vrcp.f32 %v335_v35  ;;  %vm345_vm8 = vmor %vm343_vm7, %vm344_vm0  ;;  %v364_v58 = vand.u32 2147483648, %v335_v35  ;;  %v362_v62 = vand.u32 2147483647, %v335_v35  ;;  %vm358_vm13 = vweird.f32 %v335_v35 }
 0x245   :  { %v340_v38 = vsub.f32 1.0, %v339_v36 }
 0x246   :  { %v285_v40 = vld [vmem:[#allocation2 + $0x18] sm:$0x1]  ;;  %v365_v1 = vor.u32 1.1754944e-38, %v364_v58  ;;  %vm363_vm15 = vcmp.eq.f32.partialorder %v362_v62, 8.507059e+37 }
 0x247   :  { %v341_v41 = vmul.f32 %v2116_v34, %v340_v38  ;;  %v321_v43 = vadd.f32 %v313_v37, %v285_v40 }
 0x249   :  { %v2118_v44 = vpop.eup %2117  ;;  %v342_v45 = vadd.f32 %v2116_v34, %v341_v41  ;;  %v2014_v46 = vmul.f32 -1.442695, %v321_v43 }
 0x24a   :  { %v2120_v47 = vpop.eup %2119  ;;  %v336_v49 = vadd.f32 1.0, %v2118_v44 }
 0x24b   :  { %v346_v50 = vsel %vm345_vm8, %v2116_v34, %v342_v45  ;;  %v354_v51 = vmul.f32 %v2120_v47, %v335_v35  ;;  %2121 = vpow2.f32 %v2014_v46  ;;  %vm359_vm11 = vweird.f32 %v2120_v47 }
 0x24c   :  { %v2601_v52 = vsel %vm348_vm9, %v350_v48, %v346_v50  ;;  %2123 = vrcp.f32 %v336_v49  ;;  %vm360_vm14 = vmor %vm358_vm13, %vm359_vm11  ;;  %v379_v57 = vand.u32 2147483648, %v336_v49  ;;  %v377_v4 = vand.u32 2147483647, %v336_v49 }
 0x24d   :  { %v398_v53 = vmul.f32 2.0, %v2601_v52  ;;  %v355_v54 = vsub.f32 1.0, %v354_v51  ;;  %vm373_vm5 = vweird.f32 %v336_v49  ;;  %v406_v43 = vmul.f32 0.0, %v2601_v52 }
 0x24e   :  { %v380_v5 = vor.u32 1.1754944e-38, %v379_v57  ;;  %vm378_vm6 = vcmp.eq.f32.partialorder %v377_v4, 8.507059e+37  ;;  %vm3134_vm9 = vcmask 1045509   ;;  %vm3131_vm11 = vcmask 1046534  }
 0x24f   :  { %v2015_v60 = vadd.f32 -1.0, %v398_v53  ;;  %v356_v61 = vmul.f32 %v2120_v47, %v355_v54  ;;  %vm3130_vm13 = vcmask 1047559  }
 0x251   :  { %v2122_v63 = vpop.eup %2121  ;;  %414 = vrot.lane.b32.xlu2 %v2015_v60, %s2413_s4  ;;  %v357_v55 = vadd.f32 %v2120_v47, %v356_v61 }
 0x252   :  { %v2124_v0 = vpop.eup %2123  ;;  %v337_v6 = vadd.f32 1.0, %v2122_v63 }
 0x253   :  { %v361_v10 = vsel %vm360_vm14, %v2120_v47, %v357_v55  ;;  %v369_v12 = vmul.f32 %v2124_v0, %v336_v49  ;;  %vm374_vm4 = vweird.f32 %v2124_v0  ;;  %vm3129_vm14 = vcmask 261120  }
 0x254   :  { %v2605_v13 = vsel %vm363_vm15, %v365_v1, %v361_v10  ;;  %2125 = vrcp.f32 %v337_v6  ;;  %vm375_vm10 = vmor %vm373_vm5, %vm374_vm4  ;;  %v394_v21 = vand.u32 2147483648, %v337_v6  ;;  %v392_v24 = vand.u32 2147483647, %v337_v6 }
 0x255   :  { %v399_v14 = vmul.f32 2.0, %v2605_v13  ;;  %v370_v56 = vsub.f32 1.0, %v369_v12  ;;  %vm388_vm0 = vweird.f32 %v337_v6  ;;  %v407_v39 = vmul.f32 0.0, %v2605_v13 }
 0x256   :  { %v395_v26 = vor.u32 1.1754944e-38, %v394_v21  ;;  %vm393_vm8 = vcmp.eq.f32.partialorder %v392_v24, 8.507059e+37  ;;  %v496_v21 = vld [vmem:[#allocation2 + $0x9] sm:$0x1] }
 0x257   :  { %v2016_v2 = vadd.f32 -1.0, %v399_v14  ;;  %v371_v3 = vmul.f32 %v2124_v0, %v370_v56 }
 0x259   :  { %416 = vrot.lane.b32.xlu1 %v2016_v2, %s2413_s4  ;;  %v372_v59 = vadd.f32 %v2124_v0, %v371_v3 }
 0x25a   :  { %v2126_v15 = vpop.eup %2125 }
 0x25b   :  { %v376_v16 = vsel %vm375_vm10, %v2124_v0, %v372_v59  ;;  %v384_v17 = vmul.f32 %v2126_v15, %v337_v6  ;;  %vm389_vm12 = vweird.f32 %v2126_v15 }
 0x25c   :  { %v381_v18 = vsel %vm378_vm6, %v380_v5, %v376_v16  ;;  %vm390_vm7 = vmor %vm388_vm0, %vm389_vm12  ;;  %v495_v5 = vld [vmem:[#allocation2 + $0x1] sm:$0x1] }
 0x25d   :  { %v400_v19 = vmul.f32 2.0, %v381_v18  ;;  %v385_v20 = vsub.f32 1.0, %v384_v17  ;;  %v408_v45 = vmul.f32 0.0, %v381_v18 }
 0x25f   :  { %v2017_v22 = vadd.f32 -1.0, %v400_v19  ;;  %v386_v23 = vmul.f32 %v2126_v15, %v385_v20 }
 0x261   :  { %418 = vrot.lane.b32.xlu2 %v2017_v22, %s2413_s4  ;;  %v387_v25 = vadd.f32 %v2126_v15, %v386_v23  ;;  %v497_v22 = vld [vmem:[#allocation2 + $0x11] sm:$0x1]  ;;  %v498_v23 = vld [vmem:[#allocation2 + $0x19] sm:$0x1] }
 0x263   :  { %v391_v27 = vsel %vm390_vm7, %v2126_v15, %v387_v25 }
 0x264   :  { %v396_v28 = vsel %vm393_vm8, %v395_v26, %v391_v27 }
 0x265   :  { %v401_v29 = vmul.f32 2.0, %v396_v28  ;;  %v409_v49 = vmul.f32 0.0, %v396_v28 }
 0x267   :  { %v2018_v30 = vadd.f32 -1.0, %v401_v29 }
 0x269   :  { %420 = vrot.lane.b32.xlu2 %v2018_v30, %s2413_s4 }
 0x2ab   :  { %v415_v31 = vpop.permute.xlu2 %414 }
 0x2ac   :  { %v426_v32 = vmul.f32 %v415_v31, %v2601_v52 }
 0x2ae   :  { %434 = vrot.lane.b32.xlu1 %v426_v32, %s2414_s11 }
 0x2bb   :  { %v419_v35 = vpop.permute.xlu2 %418 }
 0x2bc   :  { %v428_v36 = vmul.f32 %v419_v35, %v381_v18 }
 0x2c3   :  { %v421_v37 = vpop.permute.xlu2 %420 }
 0x2c4   :  { %v429_v38 = vmul.f32 %v421_v37, %v396_v28 }
 0x2cb   :  { %v417_v33 = vpop.permute.xlu1 %416 }
 0x2cc   :  { %v427_v34 = vmul.f32 %v417_v33, %v2605_v13 }
 0x2ce   :  { %436 = vrot.lane.b32.xlu2 %v427_v34, %s2414_s11 }
 0x2d6   :  { %438 = vrot.lane.b32.xlu2 %v428_v36, %s2414_s11 }
 0x2de   :  { %440 = vrot.lane.b32.xlu2 %v429_v38, %s2414_s11 }
 0x320   :  { %v435_v42 = vpop.permute.xlu1 %434 }
 0x321   :  { %v2622_v44 = vadd.f32 %v435_v42, %v406_v43 }
 0x328   :  { %v437_v40 = vpop.permute.xlu2 %436 }
 0x329   :  { %v2618_v41 = vadd.f32 %v437_v40, %v407_v39 }
 0x32b   :  { %2127 = vtanh.f32 %v2618_v41 }
 0x32c   :  { %2129 = vtanh.f32 %v2622_v44 }
 0x330   :  { %v439_v46 = vpop.permute.xlu2 %438 }
 0x331   :  { %v2128_v47 = vpop.eup %2127  ;;  %v2624_v48 = vadd.f32 %v439_v46, %v408_v45 }
 0x332   :  { %460 = vrot.lane.b32.xlu1 %v2128_v47, %s2413_s4  ;;  %v2130_v50 = vpop.eup %2129 }
 0x333   :  { %2131 = vtanh.f32 %v2624_v48 }
 0x338   :  { %v441_v51 = vpop.permute.xlu2 %440 }
 0x339   :  { %v2132_v53 = vpop.eup %2131  ;;  %v2629_v54 = vadd.f32 %v441_v51, %v409_v49 }
 0x33a   :  { %462 = vrot.lane.b32.xlu2 %v2132_v53, %s2413_s4  ;;  %458 = vrot.lane.b32.xlu1 %v2130_v50, %s2413_s4 }
 0x33b   :  { %2133 = vtanh.f32 %v2629_v54 }
 0x341   :  { %v2134_v58 = vpop.eup %2133 }
 0x342   :  { %464 = vrot.lane.b32.xlu0 %v2134_v58, %s2413_s4 }
 0x394   :  { %v463_v61 = vpop.permute.xlu2 %462 }
 0x395   :  { %v472_v63 = vmul.f32 %v463_v61, %v381_v18 }
 0x397   :  { %v482_v6 = vrot.slane %v472_v63, 6 }
 0x3a4   :  { %v461_v60 = vpop.permute.xlu1 %460 }
 0x3a5   :  { %v471_v62 = vmul.f32 %v461_v60, %v2605_v13 }
 0x3a7   :  { %v478_v0 = vrot.slane %v471_v62, 7 }
 0x3ac   :  { %v459_v55 = vpop.permute.xlu1 %458 }
 0x3ad   :  { %v470_v1 = vmul.f32 %v459_v55, %v2601_v52 }
 0x3af   :  { %v479_v10 = vsel %vm103_vm1, %v478_v0, %v470_v1 }
 0x3b0   :  { %v481_v12 = vsel %vm3134_vm9, %v478_v0, %v479_v10  ;;  %v499_v13 = vsel %vm3133_vm2, %v482_v6, %v479_v10 }
 0x3b1   :  { %v483_v14 = vsel %vm3133_vm2, %v482_v6, %v481_v12 }
 0x3b2   :  { %v485_v56 = vsel %vm3131_vm11, %v482_v6, %v483_v14 }
 0x3b4   :  { %v465_v57 = vpop.permute.xlu0 %464 }
 0x3b5   :  { %v473_v2 = vmul.f32 %v465_v57, %v396_v28 }
 0x3b7   :  { %v486_v3 = vrot.slane %v473_v2, 5 }
 0x3b9   :  { %v500_v4 = vsel %vm3132_vm3, %v486_v3, %v499_v13  ;;  %v487_v52 = vsel %vm3132_vm3, %v486_v3, %v485_v56 }
 0x3ba   :  { %501 = vrot.lane.b32.xlu2 %v500_v4, %s2414_s11  ;;  %v2646_v59 = vsel %vm3130_vm13, %v486_v3, %v487_v52 }
 0x414   :  { %v502_v15 = vpop.permute.xlu2 %501 }
 0x415   :  { %2019 = vmatmul.msk.f32.vlgmr.msra.gmra.mxu2 %vm3129_vm14, %v502_v15 }
 0x416   :  { %1784 = vmatpush.msra.mxu2 %v2507_v7 }
 0x418   :  { %1785 = vmatpush.msra.mxu2 %v2509_v8 }
 0x41a   :  { %1786 = vmatpush.msra.mxu2 %v2513_v9 }
 0x41c   :  { %1787 = vmatpush.msra.mxu2 %v2522_v11 }
 0x498   :  { %v522_v16 = vpop.f32.mrf.mxu2 }
 0x499   :  { %v526_v17 = vrot.slane %v522_v16, 1  ;;  %v527_v18 = vrot.slane %v522_v16, 2  ;;  %v528_v19 = vrot.slane %v522_v16, 3  ;;  %v533_v20 = vadd.f32 %v522_v16, %v495_v5 }
 0x49b   :  { %v534_v24 = vadd.f32 %v526_v17, %v496_v21  ;;  %v535_v25 = vadd.f32 %v527_v18, %v497_v22  ;;  %v536_v26 = vadd.f32 %v528_v19, %v498_v23  ;;  %v2020_v27 = vmul.f32 -1.442695, %v533_v20 }
 0x49d   :  { %2135 = vpow2.f32 %v2020_v27  ;;  %v2021_v7 = vmul.f32 -1.442695, %v534_v24  ;;  %v2022_v8 = vmul.f32 -1.442695, %v535_v25  ;;  %v2023_v28 = vmul.f32 -1.442695, %v536_v26 }
 0x49f   :  { %2137 = vpow2.f32 %v2021_v7 }
 0x4a0   :  { %2139 = vpow2.f32 %v2022_v8 }
 0x4a1   :  { %2141 = vpow2.f32 %v2023_v28 }
 0x4a3   :  { %v2136_v9 = vpop.eup %2135 }
 0x4a4   :  { %v2653_v11 = vadd.f32 1.0, %v2136_v9 }
 0x4a5   :  { %v2138_v29 = vpop.eup %2137 }
 0x4a6   :  { %v2140_v30 = vpop.eup %2139  ;;  %v550_v31 = vadd.f32 1.0, %v2138_v29  ;;  %2143 = vrcp.f32 %v2653_v11  ;;  %vm558_vm15 = vweird.f32 %v2653_v11  ;;  %v562_v42 = vand.u32 2147483647, %v2653_v11 }
 0x4a7   :  { %v2142_v32 = vpop.eup %2141  ;;  %v551_v33 = vadd.f32 1.0, %v2140_v30  ;;  %v564_v47 = vand.u32 2147483648, %v2653_v11 }
 0x4a8   :  { %v552_v34 = vadd.f32 1.0, %v2142_v32  ;;  %2145 = vrcp.f32 %v550_v31  ;;  %vm573_vm4 = vweird.f32 %v550_v31  ;;  %v577_v46 = vand.u32 2147483647, %v550_v31 }
 0x4a9   :  { %2147 = vrcp.f32 %v551_v33  ;;  %vm588_vm5 = vweird.f32 %v551_v33  ;;  %v592_v58 = vand.u32 2147483647, %v551_v33  ;;  %v579_v60 = vand.u32 2147483648, %v550_v31 }
 0x4aa   :  { %2149 = vrcp.f32 %v552_v34  ;;  %v594_v62 = vand.u32 2147483648, %v551_v33  ;;  %v607_v55 = vand.u32 2147483647, %v552_v34  ;;  %v609_v0 = vand.u32 2147483648, %v552_v34 }
 0x4ab   :  { %vm603_vm8 = vweird.f32 %v552_v34  ;;  %vm593_vm14 = vcmp.eq.f32.partialorder %v592_v58, 8.507059e+37  ;;  %v580_v57 = vor.u32 1.1754944e-38, %v579_v60  ;;  %vm578_vm3 = vcmp.eq.f32.partialorder %v577_v46, 8.507059e+37 }
 0x4ac   :  { %v2144_v35 = vpop.eup %2143  ;;  %v595_v3 = vor.u32 1.1754944e-38, %v594_v62  ;;  %vm608_vm9 = vcmp.eq.f32.partialorder %v607_v55, 8.507059e+37  ;;  %v610_v4 = vor.u32 1.1754944e-38, %v609_v0  ;;  %v565_v21 = vor.u32 1.1754944e-38, %v564_v47 }
 0x4ad   :  { %v554_v36 = vmul.f32 %v2144_v35, %v2653_v11  ;;  %vm559_vm10 = vweird.f32 %v2144_v35 }
 0x4ae   :  { %v2146_v37 = vpop.eup %2145  ;;  %vm2662_vm7 = vmor %vm558_vm15, %vm559_vm10  ;;  %vm563_vm15 = vcmp.eq.f32.partialorder %v562_v42, 8.507059e+37 }
 0x4af   :  { %v2148_v38 = vpop.eup %2147  ;;  %v569_v39 = vmul.f32 %v2146_v37, %v550_v31  ;;  %v555_v40 = vsub.f32 1.0, %v554_v36  ;;  %vm574_vm6 = vweird.f32 %v2146_v37 }
 0x4b0   :  { %v2150_v43 = vpop.eup %2149  ;;  %v584_v45 = vmul.f32 %v2148_v38, %v551_v33  ;;  %vm589_vm12 = vweird.f32 %v2148_v38  ;;  %vm575_vm13 = vmor %vm573_vm4, %vm574_vm6  ;;  %vm3147_vm4 = vcmask 1047559  }
 0x4b1   :  { %v599_v49 = vmul.f32 %v2150_v43, %v552_v34  ;;  %v570_v50 = vsub.f32 1.0, %v569_v39  ;;  %v556_v51 = vmul.f32 %v2144_v35, %v555_v40  ;;  %vm604_vm0 = vweird.f32 %v2150_v43  ;;  %vm590_vm11 = vmor %vm588_vm5, %vm589_vm12 }
 0x4b2   :  { %v585_v53 = vsub.f32 1.0, %v584_v45  ;;  %vm605_vm2 = vmor %vm603_vm8, %vm604_vm0  ;;  %vm3148_vm5 = vcmask 261120  }
 0x4b3   :  { %v600_v61 = vsub.f32 1.0, %v599_v49  ;;  %v571_v63 = vmul.f32 %v2146_v37, %v570_v50  ;;  %v557_v12 = vadd.f32 %v2144_v35, %v556_v51 }
 0x4b4   :  { %v586_v1 = vmul.f32 %v2148_v38, %v585_v53 }
 0x4b5   :  { %v601_v6 = vmul.f32 %v2150_v43, %v600_v61  ;;  %v572_v10 = vadd.f32 %v2146_v37, %v571_v63  ;;  %v561_v18 = vsel %vm2662_vm7, %v2144_v35, %v557_v12 }
 0x4b6   :  { %v587_v56 = vadd.f32 %v2148_v38, %v586_v1  ;;  %v566_v25 = vsel %vm563_vm15, %v565_v21, %v561_v18  ;;  %v710_v18 = vld [vmem:[#allocation2 + $0x1a] sm:$0x1] }
 0x4b7   :  { %v602_v2 = vadd.f32 %v2150_v43, %v601_v6  ;;  %v576_v13 = vsel %vm575_vm13, %v2146_v37, %v572_v10  ;;  %v613_v27 = vmul.f32 2.0, %v566_v25  ;;  %vm3145_vm13 = vcmask 1046534  }
 0x4b8   :  { %v591_v52 = vsel %vm590_vm11, %v2148_v38, %v587_v56  ;;  %v581_v15 = vsel %vm578_vm3, %v580_v57, %v576_v13  ;;  %vm3142_vm3 = vcmask 1042434  }
 0x4b9   :  { %v606_v5 = vsel %vm605_vm2, %v2150_v43, %v602_v2  ;;  %v596_v16 = vsel %vm593_vm14, %v595_v3, %v591_v52  ;;  %v614_v17 = vmul.f32 2.0, %v581_v15  ;;  %v2024_v7 = vadd.f32 -1.0, %v613_v27  ;;  %vm3144_vm11 = vmmov %vm3142_vm3  ;;  %v707_v3 = vld [vmem:[#allocation2 + $0x2] sm:$0x1] }
 0x4ba   :  { %v611_v19 = vsel %vm608_vm9, %v610_v4, %v606_v5  ;;  %v615_v20 = vmul.f32 2.0, %v596_v16  ;;  %v622_v33 = vmul.f32 %v581_v15, %v2618_v41  ;;  %v623_v35 = vmul.f32 %v596_v16, %v2624_v48 }
 0x4bb   :  { %v616_v22 = vmul.f32 2.0, %v611_v19  ;;  %v2025_v23 = vadd.f32 -1.0, %v614_v17  ;;  %v624_v39 = vmul.f32 %v611_v19, %v2629_v54  ;;  %v621_v48 = vmul.f32 %v566_v25, %v2622_v44  ;;  %v709_v17 = vld [vmem:[#allocation2 + $0x12] sm:$0x1] }
 0x4bc   :  { %v2026_v24 = vadd.f32 -1.0, %v615_v20  ;;  %vm3141_vm2 = vcmask 1045509   ;;  %vm3143_vm9 = vcmask 1043459  }
 0x4bd   :  { %v2027_v26 = vadd.f32 -1.0, %v616_v22  ;;  %631 = vrot.lane.b32.xlu1 %v2025_v23, %s2413_s4  ;;  %vm3146_vm14 = vmmov %vm3143_vm9 }
 0x4be   :  { %633 = vrot.lane.b32.xlu2 %v2026_v24, %s2413_s4 }
 0x4bf   :  { %635 = vrot.lane.b32.xlu0 %v2027_v26, %s2413_s4 }
 0x4c5   :  { %629 = vrot.lane.b32.xlu1 %v2024_v7, %s2413_s4 }
 0x518   :  { %v634_v8 = vpop.permute.xlu2 %633 }
 0x519   :  { %v643_v28 = vmul.f32 %v634_v8, %v596_v16 }
 0x51b   :  { %653 = vrot.lane.b32.xlu1 %v643_v28, %s2414_s11 }
 0x52f   :  { %v632_v9 = vpop.permute.xlu1 %631 }
 0x530   :  { %v642_v11 = vmul.f32 %v632_v9, %v581_v15 }
 0x531   :  { %v636_v29 = vpop.permute.xlu0 %635 }
 0x532   :  { %651 = vrot.lane.b32.xlu2 %v642_v11, %s2414_s11  ;;  %v644_v31 = vmul.f32 %v636_v29, %v611_v19 }
 0x537   :  { %v630_v30 = vpop.permute.xlu1 %629 }
 0x538   :  { %v641_v32 = vmul.f32 %v630_v30, %v566_v25 }
 0x53a   :  { %655 = vrot.lane.b32.xlu2 %v644_v31, %s2414_s11  ;;  %649 = vrot.lane.b32.xlu0 %v641_v32, %s2414_s11 }
 0x58c   :  { %v652_v34 = vpop.permute.xlu2 %651 }
 0x58d   :  { %v2680_v36 = vadd.f32 %v652_v34, %v622_v33  ;;  %v654_v37 = vpop.permute.xlu1 %653 }
 0x58e   :  { %v2682_v38 = vadd.f32 %v654_v37, %v623_v35 }
 0x58f   :  { %2151 = vtanh.f32 %v2680_v36 }
 0x590   :  { %2153 = vtanh.f32 %v2682_v38 }
 0x594   :  { %v656_v40 = vpop.permute.xlu2 %655 }
 0x595   :  { %v2152_v42 = vpop.eup %2151  ;;  %v2687_v43 = vadd.f32 %v656_v40, %v624_v39 }
 0x596   :  { %v2154_v45 = vpop.eup %2153  ;;  %675 = vrot.lane.b32.xlu1 %v2152_v42, %s2413_s4 }
 0x597   :  { %2155 = vtanh.f32 %v2687_v43  ;;  %677 = vrot.lane.b32.xlu0 %v2154_v45, %s2413_s4 }
 0x59d   :  { %v2156_v41 = vpop.eup %2155 }
 0x59e   :  { %679 = vrot.lane.b32.xlu1 %v2156_v41, %s2413_s4 }
 0x5ac   :  { %v650_v46 = vpop.permute.xlu0 %649 }
 0x5ad   :  { %v2694_v47 = vadd.f32 %v650_v46, %v621_v48 }
 0x5af   :  { %2157 = vtanh.f32 %v2694_v47 }
 0x5b5   :  { %v2158_v54 = vpop.eup %2157 }
 0x5b6   :  { %673 = vrot.lane.b32.xlu2 %v2158_v54, %s2413_s4 }
 0x608   :  { %v676_v49 = vpop.permute.xlu1 %675 }
 0x609   :  { %v678_v50 = vpop.permute.xlu0 %677  ;;  %v686_v51 = vmul.f32 %v676_v49, %v581_v15 }
 0x60a   :  { %v687_v53 = vmul.f32 %v678_v50, %v596_v16  ;;  %v708_v16 = vld [vmem:[#allocation2 + $0xa] sm:$0x1] }
 0x60b   :  { %v693_v61 = vrot.slane %v686_v51, 7 }
 0x60c   :  { %v696_v55 = vrot.slane %v687_v53, 6 }
 0x610   :  { %v674_v58 = vpop.permute.xlu2 %673  ;;  %v680_v60 = vpop.permute.xlu1 %679 }
 0x611   :  { %v685_v62 = vmul.f32 %v674_v58, %v566_v25  ;;  %v688_v63 = vmul.f32 %v680_v60, %v611_v19 }
 0x613   :  { %v694_v44 = vsel %vm103_vm1, %v693_v61, %v685_v62  ;;  %v699_v0 = vrot.slane %v688_v63, 5 }
 0x614   :  { %v695_v1 = vsel %vm3141_vm2, %v693_v61, %v694_v44  ;;  %v711_v6 = vsel %vm3142_vm3, %v696_v55, %v694_v44 }
 0x615   :  { %v712_v10 = vsel %vm3143_vm9, %v699_v0, %v711_v6  ;;  %v697_v12 = vsel %vm3144_vm11, %v696_v55, %v695_v1 }
 0x616   :  { %713 = vrot.lane.b32.xlu0 %v712_v10, %s2414_s11  ;;  %v698_v14 = vsel %vm3145_vm13, %v696_v55, %v697_v12 }
 0x617   :  { %v700_v56 = vsel %vm3146_vm14, %v699_v0, %v698_v14 }
 0x618   :  { %v2707_v57 = vsel %vm3147_vm4, %v699_v0, %v700_v56 }
 0x688   :  { %v714_v2 = vpop.permute.xlu0 %713 }
 0x689   :  { %2028 = vmatmul.msk.f32.vlgmr.msra.gmra.mxu3 %vm3148_vm5, %v714_v2 }
 0x70c   :  { %v734_v13 = vpop.f32.mrf.mxu3 }
 0x70d   :  { %v738_v4 = vrot.slane %v734_v13, 1  ;;  %v739_v52 = vrot.slane %v734_v13, 2  ;;  %v740_v15 = vrot.slane %v734_v13, 3  ;;  %v745_v5 = vadd.f32 %v734_v13, %v707_v3 }
 0x70f   :  { %v746_v19 = vadd.f32 %v738_v4, %v708_v16  ;;  %v747_v20 = vadd.f32 %v739_v52, %v709_v17  ;;  %v748_v21 = vadd.f32 %v740_v15, %v710_v18  ;;  %v2029_v22 = vmul.f32 -1.442695, %v745_v5 }
 0x711   :  { %2159 = vpow2.f32 %v2029_v22  ;;  %v2030_v23 = vmul.f32 -1.442695, %v746_v19  ;;  %v2031_v24 = vmul.f32 -1.442695, %v747_v20  ;;  %v2032_v25 = vmul.f32 -1.442695, %v748_v21 }
 0x713   :  { %2161 = vpow2.f32 %v2030_v23 }
 0x714   :  { %2163 = vpow2.f32 %v2031_v24 }
 0x715   :  { %2165 = vpow2.f32 %v2032_v25 }
 0x717   :  { %v2160_v26 = vpop.eup %2159 }
 0x718   :  { %v761_v27 = vadd.f32 1.0, %v2160_v26 }
 0x719   :  { %v2162_v7 = vpop.eup %2161 }
 0x71a   :  { %v2164_v8 = vpop.eup %2163  ;;  %v762_v28 = vadd.f32 1.0, %v2162_v7  ;;  %2167 = vrcp.f32 %v761_v27  ;;  %v774_v30 = vand.u32 2147483647, %v761_v27  ;;  %v776_v31 = vand.u32 2147483648, %v761_v27 }
 0x71b   :  { %v2166_v9 = vpop.eup %2165  ;;  %v763_v11 = vadd.f32 1.0, %v2164_v8  ;;  %vm770_vm10 = vweird.f32 %v761_v27 }
 0x71c   :  { %v2710_v29 = vadd.f32 1.0, %v2166_v9  ;;  %2169 = vrcp.f32 %v762_v28  ;;  %vm2713_vm6 = vcmp.eq.f32.partialorder %v774_v30, 8.507059e+37  ;;  %v777_v40 = vor.u32 1.1754944e-38, %v776_v31 }
 0x71d   :  { %2171 = vrcp.f32 %v763_v11  ;;  %vm785_vm12 = vweird.f32 %v762_v28  ;;  %vm800_vm0 = vweird.f32 %v763_v11  ;;  %v804_v48 = vand.u32 2147483647, %v763_v11 }
 0x71e   :  { %2173 = vrcp.f32 %v2710_v29  ;;  %v806_v46 = vand.u32 2147483648, %v763_v11  ;;  %v789_v53 = vand.u32 2147483647, %v762_v28  ;;  %v791_v58 = vand.u32 2147483648, %v762_v28 }
 0x71f   :  { %vm815_vm8 = vweird.f32 %v2710_v29  ;;  %v819_v55 = vand.u32 2147483647, %v2710_v29  ;;  %v821_v44 = vand.u32 2147483648, %v2710_v29  ;;  %vm805_vm4 = vcmp.eq.f32.partialorder %v804_v48, 8.507059e+37 }
 0x720   :  { %v2168_v32 = vpop.eup %2167  ;;  %v807_v14 = vor.u32 1.1754944e-38, %v806_v46  ;;  %v792_v56 = vor.u32 1.1754944e-38, %v791_v58  ;;  %vm790_vm14 = vcmp.eq.f32.partialorder %v789_v53, 8.507059e+37 }
 0x721   :  { %v766_v33 = vmul.f32 %v2168_v32, %v761_v27  ;;  %vm771_vm7 = vweird.f32 %v2168_v32  ;;  %v822_v19 = vor.u32 1.1754944e-38, %v821_v44 }
 0x722   :  { %v2170_v34 = vpop.eup %2169  ;;  %vm772_vm2 = vmor %vm770_vm10, %vm771_vm7  ;;  %vm820_vm10 = vcmp.eq.f32.partialorder %v819_v55, 8.507059e+37 }
 0x723   :  { %v2172_v37 = vpop.eup %2171  ;;  %v767_v39 = vsub.f32 1.0, %v766_v33  ;;  %v781_v42 = vmul.f32 %v2170_v34, %v762_v28  ;;  %vm786_vm15 = vweird.f32 %v2170_v34 }
 0x724   :  { %v2174_v45 = vpop.eup %2173  ;;  %v796_v41 = vmul.f32 %v2172_v37, %v763_v11  ;;  %vm801_vm3 = vweird.f32 %v2172_v37  ;;  %vm787_vm11 = vmor %vm785_vm12, %vm786_vm15  ;;  %vm3152_vm12 = vcmask 1042434  }
 0x725   :  { %v768_v54 = vmul.f32 %v2168_v32, %v767_v39  ;;  %v782_v49 = vsub.f32 1.0, %v781_v42  ;;  %v811_v50 = vmul.f32 %v2174_v45, %v2710_v29  ;;  %vm816_vm9 = vweird.f32 %v2174_v45  ;;  %vm802_vm13 = vmor %vm800_vm0, %vm801_vm3 }
 0x726   :  { %v797_v51 = vsub.f32 1.0, %v796_v41  ;;  %vm817_vm5 = vmor %vm815_vm8, %vm816_vm9  ;;  %vm3153_vm0 = vcmask 1046534   ;;  %vm3155_vm8 = vcmask 1043459   ;;  %vm3158_vm3 = vcmask 261120  }
 0x727   :  { %v769_v60 = vadd.f32 %v2168_v32, %v768_v54  ;;  %v783_v61 = vmul.f32 %v2170_v34, %v782_v49  ;;  %v812_v62 = vsub.f32 1.0, %v811_v50  ;;  %vm3154_vm7 = vmmov %vm3152_vm12 }
 0x728   :  { %v798_v63 = vmul.f32 %v2172_v37, %v797_v51  ;;  %vm3156_vm15 = vmmov %vm3155_vm8 }
 0x729   :  { %v773_v0 = vsel %vm772_vm2, %v2168_v32, %v769_v60  ;;  %v784_v1 = vadd.f32 %v2170_v34, %v783_v61  ;;  %v813_v6 = vmul.f32 %v2174_v45, %v812_v62  ;;  %vm3157_vm2 = vcmask 1047559  }
 0x72a   :  { %v2724_v10 = vsel %vm2713_vm6, %v777_v40, %v773_v0  ;;  %v799_v12 = vadd.f32 %v2172_v37, %v798_v63  ;;  %vm3151_vm6 = vcmask 1045509  }
 0x72b   :  { %v825_v2 = vmul.f32 2.0, %v2724_v10  ;;  %v788_v3 = vsel %vm787_vm11, %v2170_v34, %v784_v1  ;;  %v814_v13 = vadd.f32 %v2174_v45, %v813_v6  ;;  %v833_v29 = vmul.f32 %v2724_v10, %v2694_v47 }
 0x72c   :  { %v803_v4 = vsel %vm802_vm13, %v2172_v37, %v799_v12  ;;  %v793_v52 = vsel %vm790_vm14, %v792_v56, %v788_v3 }
 0x72d   :  { %v2033_v15 = vadd.f32 -1.0, %v825_v2  ;;  %v808_v5 = vsel %vm805_vm4, %v807_v14, %v803_v4  ;;  %v826_v16 = vmul.f32 2.0, %v793_v52  ;;  %v818_v17 = vsel %vm817_vm5, %v2174_v45, %v814_v13  ;;  %v919_v14 = vld [vmem:[#allocation2 + $0x3] sm:$0x1] }
 0x72e   :  { %v827_v18 = vmul.f32 2.0, %v808_v5  ;;  %v823_v22 = vsel %vm820_vm10, %v822_v19, %v818_v17  ;;  %v834_v32 = vmul.f32 %v793_v52, %v2680_v36  ;;  %v835_v42 = vmul.f32 %v808_v5, %v2682_v38 }
 0x72f   :  { %841 = vrot.lane.b32.xlu0 %v2033_v15, %s2413_s4  ;;  %v2034_v20 = vadd.f32 -1.0, %v826_v16  ;;  %v828_v23 = vmul.f32 2.0, %v823_v22  ;;  %v836_v37 = vmul.f32 %v823_v22, %v2687_v43  ;;  %v921_v15 = vld [vmem:[#allocation2 + $0x13] sm:$0x1] }
 0x730   :  { %v2035_v21 = vadd.f32 -1.0, %v827_v18 }
 0x731   :  { %843 = vrot.lane.b32.xlu2 %v2034_v20, %s2413_s4  ;;  %v2036_v24 = vadd.f32 -1.0, %v828_v23 }
 0x732   :  { %845 = vrot.lane.b32.xlu1 %v2035_v21, %s2413_s4 }
 0x739   :  { %847 = vrot.lane.b32.xlu2 %v2036_v24, %s2413_s4 }
 0x78b   :  { %v844_v25 = vpop.permute.xlu2 %843 }
 0x78c   :  { %v854_v26 = vmul.f32 %v844_v25, %v793_v52 }
 0x78e   :  { %863 = vrot.lane.b32.xlu1 %v854_v26, %s2414_s11 }
 0x793   :  { %v848_v27 = vpop.permute.xlu2 %847 }
 0x794   :  { %v856_v7 = vmul.f32 %v848_v27, %v823_v22 }
 0x796   :  { %867 = vrot.lane.b32.xlu1 %v856_v7, %s2414_s11 }
 0x7a1   :  { %v842_v8 = vpop.permute.xlu0 %841 }
 0x7a2   :  { %v853_v28 = vmul.f32 %v842_v8, %v2724_v10 }
 0x7a4   :  { %v846_v9 = vpop.permute.xlu1 %845  ;;  %861 = vrot.lane.b32.xlu2 %v853_v28, %s2414_s11 }
 0x7a5   :  { %v855_v11 = vmul.f32 %v846_v9, %v808_v5 }
 0x7a7   :  { %865 = vrot.lane.b32.xlu0 %v855_v11, %s2414_s11 }
 0x7fe   :  { %v862_v30 = vpop.permute.xlu2 %861 }
 0x7ff   :  { %v2742_v31 = vadd.f32 %v862_v30, %v833_v29 }
 0x800   :  { %v864_v33 = vpop.permute.xlu1 %863 }
 0x801   :  { %2175 = vtanh.f32 %v2742_v31  ;;  %v2746_v34 = vadd.f32 %v864_v33, %v834_v32 }
 0x803   :  { %2177 = vtanh.f32 %v2746_v34 }
 0x807   :  { %v2176_v35 = vpop.eup %2175 }
 0x808   :  { %v868_v39 = vpop.permute.xlu1 %867  ;;  %885 = vrot.lane.b32.xlu1 %v2176_v35, %s2413_s4 }
 0x809   :  { %v2178_v40 = vpop.eup %2177  ;;  %v2751_v47 = vadd.f32 %v868_v39, %v836_v37 }
 0x80a   :  { %887 = vrot.lane.b32.xlu0 %v2178_v40, %s2413_s4 }
 0x80b   :  { %2179 = vtanh.f32 %v2751_v47 }
 0x811   :  { %v2180_v36 = vpop.eup %2179 }
 0x812   :  { %891 = vrot.lane.b32.xlu0 %v2180_v36, %s2413_s4 }
 0x819   :  { %v866_v45 = vpop.permute.xlu0 %865 }
 0x81a   :  { %v2757_v41 = vadd.f32 %v866_v45, %v835_v42 }
 0x81c   :  { %2181 = vtanh.f32 %v2757_v41 }
 0x822   :  { %v2182_v43 = vpop.eup %2181 }
 0x823   :  { %889 = vrot.lane.b32.xlu2 %v2182_v43, %s2413_s4 }
 0x87a   :  { %v886_v48 = vpop.permute.xlu1 %885 }
 0x87b   :  { %v897_v51 = vmul.f32 %v886_v48, %v2724_v10 }
 0x87c   :  { %v888_v46 = vpop.permute.xlu0 %887 }
 0x87d   :  { %v898_v54 = vmul.f32 %v888_v46, %v793_v52  ;;  %v890_v49 = vpop.permute.xlu2 %889  ;;  %v920_v52 = vld [vmem:[#allocation2 + $0xb] sm:$0x1] }
 0x87e   :  { %v899_v50 = vmul.f32 %v890_v49, %v808_v5  ;;  %v922_v5 = vld [vmem:[#allocation2 + $0x1b] sm:$0x1] }
 0x87f   :  { %v905_v53 = vrot.slane %v898_v54, 7 }
 0x880   :  { %v908_v60 = vrot.slane %v899_v50, 6 }
 0x881   :  { %v906_v58 = vsel %vm103_vm1, %v905_v53, %v897_v51 }
 0x882   :  { %v907_v38 = vsel %vm3151_vm6, %v905_v53, %v906_v58  ;;  %v923_v0 = vsel %vm3154_vm7, %v908_v60, %v906_v58 }
 0x883   :  { %v909_v61 = vsel %vm3152_vm12, %v908_v60, %v907_v38 }
 0x884   :  { %v910_v62 = vsel %vm3153_vm0, %v908_v60, %v909_v61  ;;  %v892_v63 = vpop.permute.xlu0 %891 }
 0x885   :  { %v900_v55 = vmul.f32 %v892_v63, %v823_v22 }
 0x887   :  { %v911_v44 = vrot.slane %v900_v55, 5 }
 0x889   :  { %v924_v1 = vsel %vm3155_vm8, %v911_v44, %v923_v0  ;;  %v912_v6 = vsel %vm3156_vm15, %v911_v44, %v910_v62 }
 0x88a   :  { %925 = vrot.lane.b32.xlu2 %v924_v1, %s2414_s11  ;;  %v2771_v10 = vsel %vm3157_vm2, %v911_v44, %v912_v6 }
 0x8e4   :  { %v926_v12 = vpop.permute.xlu2 %925 }
 0x8e5   :  { %2037 = vmatmul.msk.f32.vlgmr.msrb.gmra.mxu1 %vm3158_vm3, %v926_v12 }
 0x962   :  { %v946_v56 = vpop.f32.mrf.mxu1 }
 0x963   :  { %v950_v2 = vrot.slane %v946_v56, 1  ;;  %v951_v3 = vrot.slane %v946_v56, 2  ;;  %v952_v13 = vrot.slane %v946_v56, 3  ;;  %v957_v4 = vadd.f32 %v946_v56, %v919_v14 }
 0x965   :  { %v958_v16 = vadd.f32 %v950_v2, %v920_v52  ;;  %v959_v17 = vadd.f32 %v951_v3, %v921_v15  ;;  %v960_v18 = vadd.f32 %v952_v13, %v922_v5  ;;  %v2038_v19 = vmul.f32 -1.442695, %v957_v4 }
 0x967   :  { %2183 = vpow2.f32 %v2038_v19  ;;  %v2039_v20 = vmul.f32 -1.442695, %v958_v16  ;;  %v2040_v21 = vmul.f32 -1.442695, %v959_v17  ;;  %v2041_v22 = vmul.f32 -1.442695, %v960_v18 }
 0x969   :  { %2185 = vpow2.f32 %v2039_v20 }
 0x96a   :  { %2187 = vpow2.f32 %v2040_v21 }
 0x96b   :  { %2189 = vpow2.f32 %v2041_v22 }
 0x96d   :  { %v2184_v23 = vpop.eup %2183 }
 0x96e   :  { %v973_v24 = vadd.f32 1.0, %v2184_v23 }
 0x96f   :  { %v2186_v25 = vpop.eup %2185 }
 0x970   :  { %v2188_v26 = vpop.eup %2187  ;;  %v974_v27 = vadd.f32 1.0, %v2186_v25  ;;  %2191 = vrcp.f32 %v973_v24  ;;  %v986_v9 = vand.u32 2147483647, %v973_v24  ;;  %v988_v11 = vand.u32 2147483648, %v973_v24 }
 0x971   :  { %v2190_v7 = vpop.eup %2189  ;;  %v975_v8 = vadd.f32 1.0, %v2188_v26  ;;  %vm982_vm9 = vweird.f32 %v973_v24 }
 0x972   :  { %v2774_v28 = vadd.f32 1.0, %v2190_v7  ;;  %2193 = vrcp.f32 %v974_v27  ;;  %vm2777_vm11 = vcmp.eq.f32.partialorder %v986_v9, 8.507059e+37  ;;  %v989_v39 = vor.u32 1.1754944e-38, %v988_v11 }
 0x973   :  { %2195 = vrcp.f32 %v975_v8  ;;  %vm997_vm13 = vweird.f32 %v974_v27  ;;  %vm1012_vm14 = vweird.f32 %v975_v8  ;;  %v1016_v45 = vand.u32 2147483647, %v975_v8 }
 0x974   :  { %2197 = vrcp.f32 %v2774_v28  ;;  %v1018_v43 = vand.u32 2147483648, %v975_v8  ;;  %v1001_v50 = vand.u32 2147483647, %v974_v27  ;;  %v1003_v51 = vand.u32 2147483648, %v974_v27 }
 0x975   :  { %vm1027_vm5 = vweird.f32 %v2774_v28  ;;  %v1031_v61 = vand.u32 2147483647, %v2774_v28  ;;  %v1033_v62 = vand.u32 2147483648, %v2774_v28  ;;  %vm1017_vm2 = vcmp.eq.f32.partialorder %v1016_v45, 8.507059e+37 }
 0x976   :  { %v2192_v29 = vpop.eup %2191  ;;  %v1019_v6 = vor.u32 1.1754944e-38, %v1018_v43  ;;  %v1004_v12 = vor.u32 1.1754944e-38, %v1003_v51  ;;  %vm1002_vm15 = vcmp.eq.f32.partialorder %v1001_v50, 8.507059e+37 }
 0x977   :  { %v978_v30 = vmul.f32 %v2192_v29, %v973_v24  ;;  %vm983_vm4 = vweird.f32 %v2192_v29  ;;  %v1034_v17 = vor.u32 1.1754944e-38, %v1033_v62 }
 0x978   :  { %v2194_v32 = vpop.eup %2193  ;;  %vm984_vm6 = vmor %vm982_vm9, %vm983_vm4  ;;  %vm1032_vm9 = vcmp.eq.f32.partialorder %v1031_v61, 8.507059e+37 }
 0x979   :  { %v2196_v35 = vpop.eup %2195  ;;  %v979_v37 = vsub.f32 1.0, %v978_v30  ;;  %v993_v40 = vmul.f32 %v2194_v32, %v974_v27  ;;  %vm998_vm10 = vweird.f32 %v2194_v32 }
 0x97a   :  { %v2198_v36 = vpop.eup %2197  ;;  %v1008_v42 = vmul.f32 %v2196_v35, %v975_v8  ;;  %vm1013_vm12 = vweird.f32 %v2196_v35  ;;  %vm999_vm7 = vmor %vm997_vm13, %vm998_vm10  ;;  %vm3162_vm13 = vcmask 1042434  }
 0x97b   :  { %v980_v48 = vmul.f32 %v2192_v29, %v979_v37  ;;  %v994_v46 = vsub.f32 1.0, %v993_v40  ;;  %v1023_v54 = vmul.f32 %v2198_v36, %v2774_v28  ;;  %vm1028_vm0 = vweird.f32 %v2198_v36  ;;  %vm1014_vm8 = vmor %vm1012_vm14, %vm1013_vm12 }
 0x97c   :  { %v1009_v49 = vsub.f32 1.0, %v1008_v42  ;;  %vm1029_vm3 = vmor %vm1027_vm5, %vm1028_vm0  ;;  %vm3163_vm14 = vcmask 1046534   ;;  %vm3165_vm5 = vcmask 1043459   ;;  %vm3168_vm12 = vcmask 261120  }
 0x97d   :  { %v981_v53 = vadd.f32 %v2192_v29, %v980_v48  ;;  %v995_v58 = vmul.f32 %v2194_v32, %v994_v46  ;;  %v1024_v60 = vsub.f32 1.0, %v1023_v54  ;;  %vm3164_vm4 = vmmov %vm3162_vm13 }
 0x97e   :  { %v1010_v38 = vmul.f32 %v2196_v35, %v1009_v49  ;;  %vm3166_vm10 = vmmov %vm3165_vm5 }
 0x97f   :  { %v985_v63 = vsel %vm984_vm6, %v2192_v29, %v981_v53  ;;  %v996_v55 = vadd.f32 %v2194_v32, %v995_v58  ;;  %v1025_v44 = vmul.f32 %v2198_v36, %v1024_v60  ;;  %vm3167_vm6 = vcmask 1047559  }
 0x980   :  { %v2788_v0 = vsel %vm2777_vm11, %v989_v39, %v985_v63  ;;  %v1011_v1 = vadd.f32 %v2196_v35, %v1010_v38  ;;  %vm3161_vm11 = vcmask 1045509  }
 0x981   :  { %v1037_v14 = vmul.f32 2.0, %v2788_v0  ;;  %v1000_v56 = vsel %vm999_vm7, %v2194_v32, %v996_v55  ;;  %v1026_v2 = vadd.f32 %v2198_v36, %v1025_v44  ;;  %v1045_v9 = vmul.f32 %v2788_v0, %v2742_v31 }
 0x982   :  { %v1015_v3 = vsel %vm1014_vm8, %v2196_v35, %v1011_v1  ;;  %v1005_v13 = vsel %vm1002_vm15, %v1004_v12, %v1000_v56  ;;  %v1129_v12 = vld [vmem:[#allocation2 + $0x4] sm:$0x1] }
 0x983   :  { %v2042_v4 = vadd.f32 -1.0, %v1037_v14  ;;  %v1020_v52 = vsel %vm1017_vm2, %v1019_v6, %v1015_v3  ;;  %v1038_v15 = vmul.f32 2.0, %v1005_v13  ;;  %v1030_v5 = vsel %vm1029_vm3, %v2198_v36, %v1026_v2 }
 0x984   :  { %v1039_v16 = vmul.f32 2.0, %v1020_v52  ;;  %v1035_v20 = vsel %vm1032_vm9, %v1034_v17, %v1030_v5  ;;  %v1047_v30 = vmul.f32 %v1020_v52, %v2757_v41  ;;  %v1046_v31 = vmul.f32 %v1005_v13, %v2746_v34 }
 0x985   :  { %1053 = vrot.lane.b32.xlu2 %v2042_v4, %s2413_s4  ;;  %v2043_v18 = vadd.f32 -1.0, %v1038_v15  ;;  %v1040_v21 = vmul.f32 2.0, %v1035_v20  ;;  %v1048_v41 = vmul.f32 %v1035_v20, %v2751_v47  ;;  %v1130_v4 = vld [vmem:[#allocation2 + $0xc] sm:$0x1]  ;;  %v1132_v15 = vld [vmem:[#allocation2 + $0x1c] sm:$0x1] }
 0x986   :  { %v2044_v19 = vadd.f32 -1.0, %v1039_v16 }
 0x987   :  { %1055 = vrot.lane.b32.xlu1 %v2043_v18, %s2413_s4  ;;  %v2045_v22 = vadd.f32 -1.0, %v1040_v21 }
 0x988   :  { %1057 = vrot.lane.b32.xlu0 %v2044_v19, %s2413_s4 }
 0x98f   :  { %1059 = vrot.lane.b32.xlu1 %v2045_v22, %s2413_s4 }
 0x9df   :  { %v1054_v23 = vpop.permute.xlu2 %1053 }
 0x9e0   :  { %v1065_v24 = vmul.f32 %v1054_v23, %v2788_v0 }
 0x9e2   :  { %1073 = vrot.lane.b32.xlu1 %v1065_v24, %s2414_s11 }
 0x9f9   :  { %v1056_v25 = vpop.permute.xlu1 %1055 }
 0x9fa   :  { %v1058_v26 = vpop.permute.xlu0 %1057  ;;  %v1066_v27 = vmul.f32 %v1056_v25, %v1005_v13 }
 0x9fb   :  { %v1067_v7 = vmul.f32 %v1058_v26, %v1020_v52 }
 0x9fc   :  { %1075 = vrot.lane.b32.xlu0 %v1066_v27, %s2414_s11 }
 0x9fd   :  { %1077 = vrot.lane.b32.xlu2 %v1067_v7, %s2414_s11 }
 0xa01   :  { %v1060_v8 = vpop.permute.xlu1 %1059 }
 0xa02   :  { %v1068_v28 = vmul.f32 %v1060_v8, %v1035_v20 }
 0xa04   :  { %1079 = vrot.lane.b32.xlu0 %v1068_v28, %s2414_s11 }
 0xa54   :  { %v1074_v11 = vpop.permute.xlu1 %1073 }
 0xa55   :  { %v2806_v29 = vadd.f32 %v1074_v11, %v1045_v9 }
 0xa57   :  { %2199 = vtanh.f32 %v2806_v29  ;;  %v1078_v32 = vpop.permute.xlu2 %1077 }
 0xa58   :  { %v2810_v33 = vadd.f32 %v1078_v32, %v1047_v30 }
 0xa5a   :  { %2201 = vtanh.f32 %v2810_v33 }
 0xa5d   :  { %v2200_v35 = vpop.eup %2199 }
 0xa5e   :  { %1097 = vrot.lane.b32.xlu0 %v2200_v35, %s2413_s4 }
 0xa60   :  { %v2202_v37 = vpop.eup %2201 }
 0xa61   :  { %1101 = vrot.lane.b32.xlu1 %v2202_v37, %s2413_s4 }
 0xa6e   :  { %v1076_v39 = vpop.permute.xlu0 %1075 }
 0xa6f   :  { %v2816_v40 = vadd.f32 %v1076_v39, %v1046_v31 }
 0xa71   :  { %2203 = vtanh.f32 %v2816_v40 }
 0xa76   :  { %v1080_v36 = vpop.permute.xlu0 %1079 }
 0xa77   :  { %v2204_v42 = vpop.eup %2203  ;;  %v2820_v45 = vadd.f32 %v1080_v36, %v1048_v41 }
 0xa78   :  { %1099 = vrot.lane.b32.xlu2 %v2204_v42, %s2413_s4 }
 0xa79   :  { %2205 = vtanh.f32 %v2820_v45 }
 0xa7f   :  { %v2206_v43 = vpop.eup %2205 }
 0xa80   :  { %1103 = vrot.lane.b32.xlu2 %v2206_v43, %s2413_s4 }
 0xad0   :  { %v1098_v48 = vpop.permute.xlu0 %1097 }
 0xad1   :  { %v1109_v50 = vmul.f32 %v1098_v48, %v2788_v0 }
 0xad2   :  { %v1100_v34 = vpop.permute.xlu2 %1099 }
 0xad3   :  { %v1110_v46 = vmul.f32 %v1100_v34, %v1005_v13  ;;  %v1102_v54 = vpop.permute.xlu1 %1101 }
 0xad4   :  { %v1111_v49 = vmul.f32 %v1102_v54, %v1020_v52  ;;  %v1131_v52 = vld [vmem:[#allocation2 + $0x14] sm:$0x1] }
 0xad5   :  { %v1117_v51 = vrot.slane %v1110_v46, 7 }
 0xad6   :  { %v1120_v53 = vrot.slane %v1111_v49, 6 }
 0xad7   :  { %v1118_v47 = vsel %vm103_vm1, %v1117_v51, %v1109_v50 }
 0xad8   :  { %v1119_v58 = vsel %vm3161_vm11, %v1117_v51, %v1118_v47  ;;  %v1133_v55 = vsel %vm3164_vm4, %v1120_v53, %v1118_v47 }
 0xad9   :  { %v1121_v60 = vsel %vm3162_vm13, %v1120_v53, %v1119_v58 }
 0xada   :  { %v1122_v38 = vsel %vm3163_vm14, %v1120_v53, %v1121_v60  ;;  %v1104_v61 = vpop.permute.xlu2 %1103 }
 0xadb   :  { %v1112_v62 = vmul.f32 %v1104_v61, %v1035_v20 }
 0xadd   :  { %v1123_v63 = vrot.slane %v1112_v62, 5 }
 0xadf   :  { %v1124_v44 = vsel %vm3165_vm5, %v1123_v63, %v1122_v38  ;;  %v1134_v1 = vsel %vm3166_vm10, %v1123_v63, %v1133_v55 }
 0xae0   :  { %v2834_v0 = vsel %vm3167_vm6, %v1123_v63, %v1124_v44  ;;  %1135 = vrot.lane.b32.xlu1 %v1134_v1, %s2414_s11 }
 0xb52   :  { %v1136_v6 = vpop.permute.xlu1 %1135 }
 0xb53   :  { %2046 = vmatmul.msk.f32.vlgmr.msrb.gmra.mxu2 %vm3168_vm12, %v1136_v6 }
 0xbd6   :  { %v1156_v14 = vpop.f32.mrf.mxu2 }
 0xbd7   :  { %v1160_v56 = vrot.slane %v1156_v14, 1  ;;  %v1161_v2 = vrot.slane %v1156_v14, 2  ;;  %v1162_v3 = vrot.slane %v1156_v14, 3  ;;  %v1167_v13 = vadd.f32 %v1156_v14, %v1129_v12 }
 0xbd9   :  { %v1168_v5 = vadd.f32 %v1160_v56, %v1130_v4  ;;  %v1169_v16 = vadd.f32 %v1161_v2, %v1131_v52  ;;  %v1170_v17 = vadd.f32 %v1162_v3, %v1132_v15  ;;  %v2047_v18 = vmul.f32 -1.442695, %v1167_v13 }
 0xbdb   :  { %2207 = vpow2.f32 %v2047_v18  ;;  %v2048_v19 = vmul.f32 -1.442695, %v1168_v5  ;;  %v2049_v20 = vmul.f32 -1.442695, %v1169_v16  ;;  %v2050_v21 = vmul.f32 -1.442695, %v1170_v17 }
 0xbdd   :  { %2209 = vpow2.f32 %v2048_v19 }
 0xbde   :  { %2211 = vpow2.f32 %v2049_v20 }
 0xbdf   :  { %2213 = vpow2.f32 %v2050_v21 }
 0xbe1   :  { %v2208_v22 = vpop.eup %2207 }
 0xbe2   :  { %v1183_v23 = vadd.f32 1.0, %v2208_v22 }
 0xbe3   :  { %v2210_v24 = vpop.eup %2209 }
 0xbe4   :  { %v2212_v25 = vpop.eup %2211  ;;  %v1184_v26 = vadd.f32 1.0, %v2210_v24  ;;  %2215 = vrcp.f32 %v1183_v23  ;;  %v1196_v28 = vand.u32 2147483647, %v1183_v23  ;;  %v1198_v9 = vand.u32 2147483648, %v1183_v23 }
 0xbe5   :  { %v2214_v27 = vpop.eup %2213  ;;  %v1185_v7 = vadd.f32 1.0, %v2212_v25  ;;  %vm1192_vm0 = vweird.f32 %v1183_v23 }
 0xbe6   :  { %v2838_v8 = vadd.f32 1.0, %v2214_v27  ;;  %2217 = vrcp.f32 %v1184_v26  ;;  %vm2841_vm7 = vcmp.eq.f32.partialorder %v1196_v28, 8.507059e+37  ;;  %v1199_v39 = vor.u32 1.1754944e-38, %v1198_v9 }
 0xbe7   :  { %2219 = vrcp.f32 %v1185_v7  ;;  %vm1207_vm8 = vweird.f32 %v1184_v26  ;;  %vm1222_vm15 = vweird.f32 %v1185_v7  ;;  %v1226_v43 = vand.u32 2147483647, %v1185_v7 }
 0xbe8   :  { %2221 = vrcp.f32 %v2838_v8  ;;  %v1228_v48 = vand.u32 2147483648, %v1185_v7  ;;  %v1211_v50 = vand.u32 2147483647, %v1184_v26  ;;  %v1213_v51 = vand.u32 2147483648, %v1184_v26 }
 0xbe9   :  { %vm1237_vm3 = vweird.f32 %v2838_v8  ;;  %v1241_v38 = vand.u32 2147483647, %v2838_v8  ;;  %v1243_v61 = vand.u32 2147483648, %v2838_v8  ;;  %vm1227_vm6 = vcmp.eq.f32.partialorder %v1226_v43, 8.507059e+37 }
 0xbea   :  { %v2216_v11 = vpop.eup %2215  ;;  %v1229_v6 = vor.u32 1.1754944e-38, %v1228_v48  ;;  %v1214_v12 = vor.u32 1.1754944e-38, %v1213_v51  ;;  %vm1212_vm10 = vcmp.eq.f32.partialorder %v1211_v50, 8.507059e+37 }
 0xbeb   :  { %v1188_v30 = vmul.f32 %v2216_v11, %v1183_v23  ;;  %vm1193_vm2 = vweird.f32 %v2216_v11  ;;  %v1244_v17 = vor.u32 1.1754944e-38, %v1243_v61 }
 0xbec   :  { %v2218_v32 = vpop.eup %2217  ;;  %vm1194_vm11 = vmor %vm1192_vm0, %vm1193_vm2  ;;  %vm1242_vm0 = vcmp.eq.f32.partialorder %v1241_v38, 8.507059e+37 }
 0xbed   :  { %v2220_v37 = vpop.eup %2219  ;;  %v1189_v31 = vsub.f32 1.0, %v1188_v30  ;;  %v1203_v41 = vmul.f32 %v2218_v32, %v1184_v26  ;;  %vm1208_vm9 = vweird.f32 %v2218_v32 }
 0xbee   :  { %v2222_v36 = vpop.eup %2221  ;;  %v1218_v42 = vmul.f32 %v2220_v37, %v1185_v7  ;;  %vm1223_vm13 = vweird.f32 %v2220_v37  ;;  %vm1209_vm4 = vmor %vm1207_vm8, %vm1208_vm9  ;;  %vm3172_vm8 = vcmask 1042434  }
 0xbef   :  { %v1190_v34 = vmul.f32 %v2216_v11, %v1189_v31  ;;  %v1204_v46 = vsub.f32 1.0, %v1203_v41  ;;  %v1233_v54 = vmul.f32 %v2222_v36, %v2838_v8  ;;  %vm1238_vm14 = vweird.f32 %v2222_v36  ;;  %vm1224_vm5 = vmor %vm1222_vm15, %vm1223_vm13 }
 0xbf0   :  { %v1219_v49 = vsub.f32 1.0, %v1218_v42  ;;  %vm1239_vm12 = vmor %vm1237_vm3, %vm1238_vm14  ;;  %vm3173_vm15 = vcmask 1046534   ;;  %vm3175_vm3 = vcmask 1043459   ;;  %vm3178_vm13 = vcmask 261120  }
 0xbf1   :  { %v1191_v47 = vadd.f32 %v2216_v11, %v1190_v34  ;;  %v1205_v53 = vmul.f32 %v2218_v32, %v1204_v46  ;;  %v1234_v58 = vsub.f32 1.0, %v1233_v54  ;;  %vm3174_vm2 = vmmov %vm3172_vm8 }
 0xbf2   :  { %v1220_v60 = vmul.f32 %v2220_v37, %v1219_v49  ;;  %vm3176_vm9 = vmmov %vm3175_vm3 }
 0xbf3   :  { %v1195_v62 = vsel %vm1194_vm11, %v2216_v11, %v1191_v47  ;;  %v1206_v63 = vadd.f32 %v2218_v32, %v1205_v53  ;;  %v1235_v55 = vmul.f32 %v2222_v36, %v1234_v58  ;;  %vm3177_vm11 = vcmask 1047559  }
 0xbf4   :  { %v2852_v44 = vsel %vm2841_vm7, %v1199_v39, %v1195_v62  ;;  %v1221_v1 = vadd.f32 %v2220_v37, %v1220_v60  ;;  %vm3171_vm7 = vcmask 1045509  }
 0xbf5   :  { %v1247_v14 = vmul.f32 2.0, %v2852_v44  ;;  %v1210_v56 = vsel %vm1209_vm4, %v2218_v32, %v1206_v63  ;;  %v1236_v2 = vadd.f32 %v2222_v36, %v1235_v55 }
 0xbf6   :  { %v1225_v3 = vsel %vm1224_vm5, %v2220_v37, %v1221_v1  ;;  %v1215_v13 = vsel %vm1212_vm10, %v1214_v12, %v1210_v56 }
 0xbf7   :  { %v2051_v4 = vadd.f32 -1.0, %v1247_v14  ;;  %v1230_v52 = vsel %vm1227_vm6, %v1229_v6, %v1225_v3  ;;  %v1248_v15 = vmul.f32 2.0, %v1215_v13  ;;  %v1240_v5 = vsel %vm1239_vm12, %v2222_v36, %v1236_v2  ;;  %v1340_v14 = vld [vmem:[#allocation2 + $0x5] sm:$0x1] }
 0xbf8   :  { %v1249_v16 = vmul.f32 2.0, %v1230_v52  ;;  %v1245_v20 = vsel %vm1242_vm0, %v1244_v17, %v1240_v5  ;;  %v1256_v9 = vmul.f32 %v1215_v13, %v2816_v40  ;;  %v1257_v11 = vmul.f32 %v1230_v52, %v2810_v33  ;;  %v1343_v5 = vld [vmem:[#allocation2 + $0x1d] sm:$0x1] }
 0xbf9   :  { %1263 = vrot.lane.b32.xlu1 %v2051_v4, %s2413_s4  ;;  %v2052_v18 = vadd.f32 -1.0, %v1248_v15  ;;  %v1250_v21 = vmul.f32 2.0, %v1245_v20  ;;  %v1258_v31 = vmul.f32 %v1245_v20, %v2820_v45  ;;  %v1255_v40 = vmul.f32 %v2852_v44, %v2806_v29  ;;  %v1342_v15 = vld [vmem:[#allocation2 + $0x15] sm:$0x1] }
 0xbfa   :  { %v2053_v19 = vadd.f32 -1.0, %v1249_v16 }
 0xbfb   :  { %1265 = vrot.lane.b32.xlu0 %v2052_v18, %s2413_s4  ;;  %v2054_v22 = vadd.f32 -1.0, %v1250_v21 }
 0xbfc   :  { %1267 = vrot.lane.b32.xlu2 %v2053_v19, %s2413_s4 }
 0xc03   :  { %1269 = vrot.lane.b32.xlu0 %v2054_v22, %s2413_s4 }
 0xc56   :  { %v1268_v23 = vpop.permute.xlu2 %1267 }
 0xc57   :  { %v1277_v24 = vmul.f32 %v1268_v23, %v1230_v52 }
 0xc59   :  { %1287 = vrot.lane.b32.xlu1 %v1277_v24, %s2414_s11 }
 0xc6b   :  { %v1264_v25 = vpop.permute.xlu1 %1263 }
 0xc6c   :  { %v1275_v26 = vmul.f32 %v1264_v25, %v2852_v44 }
 0xc6d   :  { %v1266_v27 = vpop.permute.xlu0 %1265 }
 0xc6e   :  { %v1276_v7 = vmul.f32 %v1266_v27, %v1215_v13  ;;  %1283 = vrot.lane.b32.xlu0 %v1275_v26, %s2414_s11 }
 0xc70   :  { %1285 = vrot.lane.b32.xlu2 %v1276_v7, %s2414_s11 }
 0xc75   :  { %v1270_v8 = vpop.permute.xlu0 %1269 }
 0xc76   :  { %v1278_v28 = vmul.f32 %v1270_v8, %v1245_v20 }
 0xc78   :  { %1289 = vrot.lane.b32.xlu2 %v1278_v28, %s2414_s11 }
 0xcca   :  { %v1286_v30 = vpop.permute.xlu2 %1285 }
 0xccb   :  { %v1288_v32 = vpop.permute.xlu1 %1287  ;;  %v2870_v35 = vadd.f32 %v1286_v30, %v1256_v9 }
 0xccc   :  { %v2872_v37 = vadd.f32 %v1288_v32, %v1257_v11 }
 0xccd   :  { %2223 = vtanh.f32 %v2870_v35 }
 0xcce   :  { %2225 = vtanh.f32 %v2872_v37 }
 0xcd2   :  { %v1290_v39 = vpop.permute.xlu2 %1289 }
 0xcd3   :  { %v2224_v41 = vpop.eup %2223  ;;  %v2877_v36 = vadd.f32 %v1290_v39, %v1258_v31 }
 0xcd4   :  { %v2226_v42 = vpop.eup %2225  ;;  %1309 = vrot.lane.b32.xlu1 %v2224_v41, %s2413_s4 }
 0xcd5   :  { %2227 = vtanh.f32 %v2877_v36  ;;  %1311 = vrot.lane.b32.xlu0 %v2226_v42, %s2413_s4 }
 0xcdb   :  { %v2228_v33 = vpop.eup %2227 }
 0xcdc   :  { %1313 = vrot.lane.b32.xlu1 %v2228_v33, %s2413_s4 }
 0xce0   :  { %v1284_v43 = vpop.permute.xlu0 %1283 }
 0xce1   :  { %v2885_v48 = vadd.f32 %v1284_v43, %v1255_v40 }
 0xce3   :  { %2229 = vtanh.f32 %v2885_v48 }
 0xce9   :  { %v2230_v45 = vpop.eup %2229 }
 0xcea   :  { %1307 = vrot.lane.b32.xlu2 %v2230_v45, %s2413_s4 }
 0xd44   :  { %v1308_v34 = vpop.permute.xlu2 %1307 }
 0xd45   :  { %v1319_v51 = vmul.f32 %v1308_v34, %v2852_v44 }
 0xd46   :  { %v1310_v46 = vpop.permute.xlu1 %1309 }
 0xd47   :  { %v1320_v54 = vmul.f32 %v1310_v46, %v1215_v13  ;;  %v1312_v49 = vpop.permute.xlu0 %1311 }
 0xd48   :  { %v1321_v50 = vmul.f32 %v1312_v49, %v1230_v52  ;;  %v1341_v52 = vld [vmem:[#allocation2 + $0xd] sm:$0x1] }
 0xd49   :  { %v1327_v47 = vrot.slane %v1320_v54, 7 }
 0xd4a   :  { %v1330_v58 = vrot.slane %v1321_v50, 6 }
 0xd4b   :  { %v1328_v53 = vsel %vm103_vm1, %v1327_v47, %v1319_v51 }
 0xd4c   :  { %v1329_v29 = vsel %vm3171_vm7, %v1327_v47, %v1328_v53  ;;  %v1344_v55 = vsel %vm3174_vm2, %v1330_v58, %v1328_v53 }
 0xd4d   :  { %v1331_v60 = vsel %vm3172_vm8, %v1330_v58, %v1329_v29 }
 0xd4e   :  { %v1332_v38 = vsel %vm3173_vm15, %v1330_v58, %v1331_v60  ;;  %v1314_v61 = vpop.permute.xlu1 %1313 }
 0xd4f   :  { %v1322_v62 = vmul.f32 %v1314_v61, %v1245_v20 }
 0xd51   :  { %v1333_v63 = vrot.slane %v1322_v62, 5 }
 0xd53   :  { %v1345_v1 = vsel %vm3175_vm3, %v1333_v63, %v1344_v55  ;;  %v1334_v6 = vsel %vm3176_vm9, %v1333_v63, %v1332_v38 }
 0xd54   :  { %1346 = vrot.lane.b32.xlu0 %v1345_v1, %s2414_s11  ;;  %v2899_v44 = vsel %vm3177_vm11, %v1333_v63, %v1334_v6 }
 0xdc6   :  { %v1347_v12 = vpop.permute.xlu0 %1346 }
 0xdc7   :  { %2055 = vmatmul.msk.f32.vlgmr.msrb.gmra.mxu3 %vm3178_vm13, %v1347_v12 }
 0xe4a   :  { %v1367_v56 = vpop.f32.mrf.mxu3 }
 0xe4b   :  { %v1371_v2 = vrot.slane %v1367_v56, 1  ;;  %v1372_v3 = vrot.slane %v1367_v56, 2  ;;  %v1373_v13 = vrot.slane %v1367_v56, 3  ;;  %v1378_v4 = vadd.f32 %v1367_v56, %v1340_v14 }
 0xe4d   :  { %v1379_v16 = vadd.f32 %v1371_v2, %v1341_v52  ;;  %v1380_v17 = vadd.f32 %v1372_v3, %v1342_v15  ;;  %v1381_v18 = vadd.f32 %v1373_v13, %v1343_v5  ;;  %v2056_v19 = vmul.f32 -1.442695, %v1378_v4 }
 0xe4f   :  { %2231 = vpow2.f32 %v2056_v19  ;;  %v2057_v20 = vmul.f32 -1.442695, %v1379_v16  ;;  %v2058_v21 = vmul.f32 -1.442695, %v1380_v17  ;;  %v2059_v22 = vmul.f32 -1.442695, %v1381_v18 }
 0xe51   :  { %2233 = vpow2.f32 %v2057_v20 }
 0xe52   :  { %2235 = vpow2.f32 %v2058_v21 }
 0xe53   :  { %2237 = vpow2.f32 %v2059_v22 }
 0xe55   :  { %v2232_v23 = vpop.eup %2231 }
 0xe56   :  { %v1394_v24 = vadd.f32 1.0, %v2232_v23 }
 0xe57   :  { %v2234_v25 = vpop.eup %2233 }
 0xe58   :  { %v2236_v26 = vpop.eup %2235  ;;  %v1395_v27 = vadd.f32 1.0, %v2234_v25  ;;  %2239 = vrcp.f32 %v1394_v24  ;;  %v1407_v9 = vand.u32 2147483647, %v1394_v24  ;;  %v1409_v11 = vand.u32 2147483648, %v1394_v24 }
 0xe59   :  { %v2238_v7 = vpop.eup %2237  ;;  %v1396_v8 = vadd.f32 1.0, %v2236_v26  ;;  %vm1403_vm14 = vweird.f32 %v1394_v24 }
 0xe5a   :  { %v2902_v28 = vadd.f32 1.0, %v2238_v7  ;;  %2241 = vrcp.f32 %v1395_v27  ;;  %vm2905_vm4 = vcmp.eq.f32.partialorder %v1407_v9, 8.507059e+37  ;;  %v1410_v33 = vor.u32 1.1754944e-38, %v1409_v11 }
 0xe5b   :  { %2243 = vrcp.f32 %v1396_v8  ;;  %vm1418_vm5 = vweird.f32 %v1395_v27  ;;  %vm1433_vm10 = vweird.f32 %v1396_v8  ;;  %v1437_v34 = vand.u32 2147483647, %v1396_v8 }
 0xe5c   :  { %2245 = vrcp.f32 %v2902_v28  ;;  %v1439_v46 = vand.u32 2147483648, %v1396_v8  ;;  %v1422_v47 = vand.u32 2147483647, %v1395_v27  ;;  %v1424_v53 = vand.u32 2147483648, %v1395_v27 }
 0xe5d   :  { %vm1448_vm12 = vweird.f32 %v2902_v28  ;;  %v1452_v61 = vand.u32 2147483647, %v2902_v28  ;;  %v1454_v62 = vand.u32 2147483648, %v2902_v28  ;;  %vm1438_vm11 = vcmp.eq.f32.partialorder %v1437_v34, 8.507059e+37 }
 0xe5e   :  { %v2240_v30 = vpop.eup %2239  ;;  %v1440_v14 = vor.u32 1.1754944e-38, %v1439_v46  ;;  %v1425_v56 = vor.u32 1.1754944e-38, %v1424_v53  ;;  %vm1423_vm9 = vcmp.eq.f32.partialorder %v1422_v47, 8.507059e+37 }
 0xe5f   :  { %v1399_v32 = vmul.f32 %v2240_v30, %v1394_v24  ;;  %vm1404_vm6 = vweird.f32 %v2240_v30  ;;  %v1455_v19 = vor.u32 1.1754944e-38, %v1454_v62 }
 0xe60   :  { %v2242_v31 = vpop.eup %2241  ;;  %vm1405_vm7 = vmor %vm1403_vm14, %vm1404_vm6  ;;  %vm1453_vm14 = vcmp.eq.f32.partialorder %v1452_v61, 8.507059e+37 }
 0xe61   :  { %v2244_v41 = vpop.eup %2243  ;;  %v1400_v42 = vsub.f32 1.0, %v1399_v32  ;;  %v1414_v40 = vmul.f32 %v2242_v31, %v1395_v27  ;;  %vm1419_vm0 = vweird.f32 %v2242_v31 }
 0xe62   :  { %v2246_v43 = vpop.eup %2245  ;;  %v1429_v45 = vmul.f32 %v2244_v41, %v1396_v8  ;;  %vm1434_vm8 = vweird.f32 %v2244_v41  ;;  %vm1420_vm2 = vmor %vm1418_vm5, %vm1419_vm0  ;;  %vm3182_vm5 = vcmask 1042434  }
 0xe63   :  { %v1401_v54 = vmul.f32 %v2240_v30, %v1400_v42  ;;  %v1415_v49 = vsub.f32 1.0, %v1414_v40  ;;  %v1444_v50 = vmul.f32 %v2246_v43, %v2902_v28  ;;  %vm1449_vm15 = vweird.f32 %v2246_v43  ;;  %vm1435_vm3 = vmor %vm1433_vm10, %vm1434_vm8 }
 0xe64   :  { %v1430_v51 = vsub.f32 1.0, %v1429_v45  ;;  %vm1450_vm13 = vmor %vm1448_vm12, %vm1449_vm15  ;;  %vm3183_vm10 = vcmask 1046534   ;;  %vm3185_vm12 = vcmask 1043459   ;;  %vm3188_vm8 = vcmask 261120  }
 0xe65   :  { %v1402_v58 = vadd.f32 %v2240_v30, %v1401_v54  ;;  %v1416_v29 = vmul.f32 %v2242_v31, %v1415_v49  ;;  %v1445_v60 = vsub.f32 1.0, %v1444_v50  ;;  %vm3184_vm6 = vmmov %vm3182_vm5 }
 0xe66   :  { %v1431_v38 = vmul.f32 %v2244_v41, %v1430_v51  ;;  %vm3186_vm0 = vmmov %vm3185_vm12 }
 0xe67   :  { %v1406_v63 = vsel %vm1405_vm7, %v2240_v30, %v1402_v58  ;;  %v1417_v55 = vadd.f32 %v2242_v31, %v1416_v29  ;;  %v1446_v1 = vmul.f32 %v2246_v43, %v1445_v60  ;;  %vm3187_vm7 = vcmask 1047559  }
 0xe68   :  { %v2916_v6 = vsel %vm2905_vm4, %v1410_v33, %v1406_v63  ;;  %v1432_v12 = vadd.f32 %v2244_v41, %v1431_v38  ;;  %vm3181_vm4 = vcmask 1045509  }
 0xe69   :  { %v1458_v2 = vmul.f32 2.0, %v2916_v6  ;;  %v1421_v3 = vsel %vm1420_vm2, %v2242_v31, %v1417_v55  ;;  %v1447_v13 = vadd.f32 %v2246_v43, %v1446_v1  ;;  %v1466_v30 = vmul.f32 %v2916_v6, %v2885_v48 }
 0xe6a   :  { %v1436_v4 = vsel %vm1435_vm3, %v2244_v41, %v1432_v12  ;;  %v1426_v52 = vsel %vm1423_vm9, %v1425_v56, %v1421_v3  ;;  %v1551_v3 = vld [vmem:[#allocation2 + $0x6] sm:$0x1] }
 0xe6b   :  { %v2060_v15 = vadd.f32 -1.0, %v1458_v2  ;;  %v1441_v5 = vsel %vm1438_vm11, %v1440_v14, %v1436_v4  ;;  %v1459_v16 = vmul.f32 2.0, %v1426_v52  ;;  %v1451_v17 = vsel %vm1450_vm13, %v2246_v43, %v1447_v13 }
 0xe6c   :  { %v1460_v18 = vmul.f32 2.0, %v1441_v5  ;;  %v1456_v22 = vsel %vm1453_vm14, %v1455_v19, %v1451_v17  ;;  %v1467_v39 = vmul.f32 %v1426_v52, %v2870_v35  ;;  %v1468_v34 = vmul.f32 %v1441_v5, %v2872_v37  ;;  %v1553_v17 = vld [vmem:[#allocation2 + $0x16] sm:$0x1] }
 0xe6d   :  { %1474 = vrot.lane.b32.xlu0 %v2060_v15, %s2413_s4  ;;  %v2061_v20 = vadd.f32 -1.0, %v1459_v16  ;;  %v1461_v23 = vmul.f32 2.0, %v1456_v22  ;;  %v1469_v40 = vmul.f32 %v1456_v22, %v2877_v36  ;;  %v1552_v16 = vld [vmem:[#allocation2 + $0xe] sm:$0x1] }
 0xe6e   :  { %v2062_v21 = vadd.f32 -1.0, %v1460_v18  ;;  %v1554_v18 = vld [vmem:[#allocation2 + $0x1e] sm:$0x1] }
 0xe6f   :  { %1476 = vrot.lane.b32.xlu2 %v2061_v20, %s2413_s4  ;;  %v2063_v24 = vadd.f32 -1.0, %v1461_v23 }
 0xe70   :  { %1478 = vrot.lane.b32.xlu1 %v2062_v21, %s2413_s4 }
 0xe77   :  { %1480 = vrot.lane.b32.xlu2 %v2063_v24, %s2413_s4 }
 0xec9   :  { %v1477_v25 = vpop.permute.xlu2 %1476 }
 0xeca   :  { %v1487_v26 = vmul.f32 %v1477_v25, %v1426_v52 }
 0xecc   :  { %1496 = vrot.lane.b32.xlu1 %v1487_v26, %s2414_s11 }
 0xed1   :  { %v1481_v27 = vpop.permute.xlu2 %1480 }
 0xed2   :  { %v1489_v7 = vmul.f32 %v1481_v27, %v1456_v22 }
 0xed4   :  { %1500 = vrot.lane.b32.xlu1 %v1489_v7, %s2414_s11 }
 0xedf   :  { %v1475_v8 = vpop.permute.xlu0 %1474 }
 0xee0   :  { %v1486_v28 = vmul.f32 %v1475_v8, %v2916_v6 }
 0xee2   :  { %v1479_v9 = vpop.permute.xlu1 %1478  ;;  %1494 = vrot.lane.b32.xlu2 %v1486_v28, %s2414_s11 }
 0xee3   :  { %v1488_v11 = vmul.f32 %v1479_v9, %v1441_v5 }
 0xee5   :  { %1498 = vrot.lane.b32.xlu0 %v1488_v11, %s2414_s11 }
 0xf3c   :  { %v1495_v32 = vpop.permute.xlu2 %1494 }
 0xf3d   :  { %v2934_v31 = vadd.f32 %v1495_v32, %v1466_v30 }
 0xf3e   :  { %v1497_v41 = vpop.permute.xlu1 %1496 }
 0xf3f   :  { %2247 = vtanh.f32 %v2934_v31  ;;  %v2938_v42 = vadd.f32 %v1497_v41, %v1467_v39 }
 0xf41   :  { %2249 = vtanh.f32 %v2938_v42 }
 0xf45   :  { %v2248_v33 = vpop.eup %2247 }
 0xf46   :  { %v1501_v43 = vpop.permute.xlu1 %1500  ;;  %1518 = vrot.lane.b32.xlu1 %v2248_v33, %s2413_s4 }
 0xf47   :  { %v2250_v45 = vpop.eup %2249  ;;  %v2943_v48 = vadd.f32 %v1501_v43, %v1469_v40 }
 0xf48   :  { %1520 = vrot.lane.b32.xlu0 %v2250_v45, %s2413_s4 }
 0xf49   :  { %2251 = vtanh.f32 %v2943_v48 }
 0xf4f   :  { %v2252_v35 = vpop.eup %2251 }
 0xf50   :  { %1524 = vrot.lane.b32.xlu0 %v2252_v35, %s2413_s4 }
 0xf57   :  { %v1499_v46 = vpop.permute.xlu0 %1498 }
 0xf58   :  { %v2949_v54 = vadd.f32 %v1499_v46, %v1468_v34 }
 0xf5a   :  { %2253 = vtanh.f32 %v2949_v54 }
 0xf60   :  { %v2254_v36 = vpop.eup %2253 }
 0xf61   :  { %1522 = vrot.lane.b32.xlu2 %v2254_v36, %s2413_s4 }
 0xfb8   :  { %v1519_v49 = vpop.permute.xlu1 %1518 }
 0xfb9   :  { %v1530_v58 = vmul.f32 %v1519_v49, %v2916_v6 }
 0xfba   :  { %v1521_v50 = vpop.permute.xlu0 %1520 }
 0xfbb   :  { %v1531_v51 = vmul.f32 %v1521_v50, %v1426_v52  ;;  %v1523_v47 = vpop.permute.xlu2 %1522 }
 0xfbc   :  { %v1532_v53 = vmul.f32 %v1523_v47, %v1441_v5 }
 0xfbd   :  { %v1538_v29 = vrot.slane %v1531_v51, 7 }
 0xfbe   :  { %v1541_v38 = vrot.slane %v1532_v53, 6 }
 0xfbf   :  { %v1539_v60 = vsel %vm103_vm1, %v1538_v29, %v1530_v58 }
 0xfc0   :  { %v1540_v37 = vsel %vm3181_vm4, %v1538_v29, %v1539_v60  ;;  %v1555_v12 = vsel %vm3184_vm6, %v1541_v38, %v1539_v60 }
 0xfc1   :  { %v1542_v61 = vsel %vm3182_vm5, %v1541_v38, %v1540_v37 }
 0xfc2   :  { %v1543_v62 = vsel %vm3183_vm10, %v1541_v38, %v1542_v61  ;;  %v1525_v63 = vpop.permute.xlu0 %1524 }
 0xfc3   :  { %v1533_v55 = vmul.f32 %v1525_v63, %v1456_v22 }
 0xfc5   :  { %v1544_v1 = vrot.slane %v1533_v55, 5 }
 0xfc7   :  { %v1556_v14 = vsel %vm3185_vm12, %v1544_v1, %v1555_v12  ;;  %v1545_v56 = vsel %vm3186_vm0, %v1544_v1, %v1543_v62 }
 0xfc8   :  { %1557 = vrot.lane.b32.xlu2 %v1556_v14, %s2414_s11  ;;  %v2963_v6 = vsel %vm3187_vm7, %v1544_v1, %v1545_v56 }
0x1022   :  { %v1558_v2 = vpop.permute.xlu2 %1557 }
0x1023   :  { %2064 = vmatmul.msk.f32.vlgmr.msra.gmra.mxu1 %vm3188_vm8, %v1558_v2 }
0x10a0   :  { %v1578_v13 = vpop.f32.mrf.mxu1 }
0x10a1   :  { %v1582_v4 = vrot.slane %v1578_v13, 1  ;;  %v1583_v52 = vrot.slane %v1578_v13, 2  ;;  %v1584_v15 = vrot.slane %v1578_v13, 3  ;;  %v1589_v5 = vadd.f32 %v1578_v13, %v1551_v3 }
0x10a3   :  { %v1590_v19 = vadd.f32 %v1582_v4, %v1552_v16  ;;  %v1591_v20 = vadd.f32 %v1583_v52, %v1553_v17  ;;  %v1592_v21 = vadd.f32 %v1584_v15, %v1554_v18  ;;  %v2065_v22 = vmul.f32 -1.442695, %v1589_v5 }
0x10a5   :  { %2255 = vpow2.f32 %v2065_v22  ;;  %v2066_v23 = vmul.f32 -1.442695, %v1590_v19  ;;  %v2067_v24 = vmul.f32 -1.442695, %v1591_v20  ;;  %v2068_v25 = vmul.f32 -1.442695, %v1592_v21 }
0x10a7   :  { %2257 = vpow2.f32 %v2066_v23 }
0x10a8   :  { %2259 = vpow2.f32 %v2067_v24 }
0x10a9   :  { %2261 = vpow2.f32 %v2068_v25 }
0x10ab   :  { %v2256_v26 = vpop.eup %2255 }
0x10ac   :  { %v1605_v27 = vadd.f32 1.0, %v2256_v26 }
0x10ad   :  { %v2258_v7 = vpop.eup %2257 }
0x10ae   :  { %v2260_v8 = vpop.eup %2259  ;;  %v1606_v28 = vadd.f32 1.0, %v2258_v7  ;;  %2263 = vrcp.f32 %v1605_v27  ;;  %v1618_v32 = vand.u32 2147483647, %v1605_v27  ;;  %v1620_v39 = vand.u32 2147483648, %v1605_v27 }
0x10af   :  { %v2262_v9 = vpop.eup %2261  ;;  %v1607_v11 = vadd.f32 1.0, %v2260_v8  ;;  %vm1614_vm15 = vweird.f32 %v1605_v27 }
0x10b0   :  { %v2966_v30 = vadd.f32 1.0, %v2262_v9  ;;  %2265 = vrcp.f32 %v1606_v28  ;;  %vm2969_vm2 = vcmp.eq.f32.partialorder %v1618_v32, 8.507059e+37  ;;  %v1621_v34 = vor.u32 1.1754944e-38, %v1620_v39 }
0x10b1   :  { %2267 = vrcp.f32 %v1607_v11  ;;  %vm1629_vm3 = vweird.f32 %v1606_v28  ;;  %vm1644_vm9 = vweird.f32 %v1607_v11  ;;  %v1648_v50 = vand.u32 2147483647, %v1607_v11 }
0x10b2   :  { %2269 = vrcp.f32 %v2966_v30  ;;  %v1650_v51 = vand.u32 2147483648, %v1607_v11  ;;  %v1633_v60 = vand.u32 2147483647, %v1606_v28  ;;  %v1635_v38 = vand.u32 2147483648, %v1606_v28 }
0x10b3   :  { %vm1659_vm13 = vweird.f32 %v2966_v30  ;;  %v1663_v55 = vand.u32 2147483647, %v2966_v30  ;;  %v1665_v1 = vand.u32 2147483648, %v2966_v30  ;;  %vm1649_vm7 = vcmp.eq.f32.partialorder %v1648_v50, 8.507059e+37 }
0x10b4   :  { %v2264_v41 = vpop.eup %2263  ;;  %v1651_v13 = vor.u32 1.1754944e-38, %v1650_v51  ;;  %v1636_v4 = vor.u32 1.1754944e-38, %v1635_v38  ;;  %vm1634_vm0 = vcmp.eq.f32.partialorder %v1633_v60, 8.507059e+37 }
0x10b5   :  { %v1610_v33 = vmul.f32 %v2264_v41, %v1605_v27  ;;  %vm1615_vm11 = vweird.f32 %v2264_v41  ;;  %v1666_v23 = vor.u32 1.1754944e-38, %v1665_v1 }
0x10b6   :  { %v2266_v40 = vpop.eup %2265  ;;  %vm1616_vm4 = vmor %vm1614_vm15, %vm1615_vm11  ;;  %vm1664_vm15 = vcmp.eq.f32.partialorder %v1663_v55, 8.507059e+37 }
0x10b7   :  { %v2268_v45 = vpop.eup %2267  ;;  %v1611_v35 = vsub.f32 1.0, %v1610_v33  ;;  %v1625_v46 = vmul.f32 %v2266_v40, %v1606_v28  ;;  %vm1630_vm14 = vweird.f32 %v2266_v40 }
0x10b8   :  { %v2270_v36 = vpop.eup %2269  ;;  %v1640_v49 = vmul.f32 %v2268_v45, %v1607_v11  ;;  %vm1645_vm5 = vweird.f32 %v2268_v45  ;;  %vm1631_vm6 = vmor %vm1629_vm3, %vm1630_vm14  ;;  %vm3192_vm3 = vcmask 1042434  }
0x10b9   :  { %v1612_v47 = vmul.f32 %v2264_v41, %v1611_v35  ;;  %v1626_v53 = vsub.f32 1.0, %v1625_v46  ;;  %v1655_v58 = vmul.f32 %v2270_v36, %v2966_v30  ;;  %vm1660_vm10 = vweird.f32 %v2270_v36  ;;  %vm1646_vm12 = vmor %vm1644_vm9, %vm1645_vm5 }
0x10ba   :  { %v1641_v29 = vsub.f32 1.0, %v1640_v49  ;;  %vm1661_vm8 = vmor %vm1659_vm13, %vm1660_vm10  ;;  %vm3193_vm9 = vcmask 1046534   ;;  %vm3195_vm13 = vcmask 1043459   ;;  %vm3198_vm5 = vcmask 261120  }
0x10bb   :  { %v1613_v37 = vadd.f32 %v2264_v41, %v1612_v47  ;;  %v1627_v61 = vmul.f32 %v2266_v40, %v1626_v53  ;;  %v1656_v62 = vsub.f32 1.0, %v1655_v58  ;;  %vm3194_vm11 = vmmov %vm3192_vm3 }
0x10bc   :  { %v1642_v63 = vmul.f32 %v2268_v45, %v1641_v29  ;;  %vm3196_vm14 = vmmov %vm3195_vm13 }
0x10bd   :  { %v1617_v12 = vsel %vm1616_vm4, %v2264_v41, %v1613_v37  ;;  %v1628_v14 = vadd.f32 %v2266_v40, %v1627_v61  ;;  %v1657_v56 = vmul.f32 %v2270_v36, %v1656_v62  ;;  %vm3197_vm4 = vcmask 1047559  }
0x10be   :  { %v2980_v2 = vsel %vm2969_vm2, %v1621_v34, %v1617_v12  ;;  %v1643_v3 = vadd.f32 %v2268_v45, %v1642_v63  ;;  %vm3191_vm2 = vcmask 1045509  }
0x10bf   :  { %v1669_v52 = vmul.f32 2.0, %v2980_v2  ;;  %v1632_v15 = vsel %vm1631_vm6, %v2266_v40, %v1628_v14  ;;  %v1658_v5 = vadd.f32 %v2270_v36, %v1657_v56  ;;  %v1677_v33 = vmul.f32 %v2980_v2, %v2934_v31 }
0x10c0   :  { %v1647_v16 = vsel %vm1646_vm12, %v2268_v45, %v1643_v3  ;;  %v1637_v17 = vsel %vm1634_vm0, %v1636_v4, %v1632_v15 }
0x10c1   :  { %v2069_v18 = vadd.f32 -1.0, %v1669_v52  ;;  %v1652_v19 = vsel %vm1649_vm7, %v1651_v13, %v1647_v16  ;;  %v1670_v20 = vmul.f32 2.0, %v1637_v17  ;;  %v1662_v21 = vsel %vm1661_vm8, %v2270_v36, %v1658_v5  ;;  %v1762_v5 = vld [vmem:[#allocation2 + $0x7] sm:$0x1] }
0x10c2   :  { %v1671_v22 = vmul.f32 2.0, %v1652_v19  ;;  %v1667_v26 = vsel %vm1664_vm15, %v1666_v23, %v1662_v21  ;;  %v1679_v45 = vmul.f32 %v1652_v19, %v2949_v54  ;;  %v1678_v31 = vmul.f32 %v1637_v17, %v2938_v42  ;;  %v1763_v21 = vld [vmem:[#allocation2 + $0xf] sm:$0x1]  ;;  %v1765_v23 = vld [vmem:[#allocation2 + $0x1f] sm:$0x1] }
0x10c3   :  { %1685 = vrot.lane.b32.xlu2 %v2069_v18, %s2413_s4  ;;  %v2070_v24 = vadd.f32 -1.0, %v1670_v20  ;;  %v1672_v27 = vmul.f32 2.0, %v1667_v26  ;;  %v1680_v54 = vmul.f32 %v1667_v26, %v2943_v48 }
0x10c4   :  { %v2071_v25 = vadd.f32 -1.0, %v1671_v22  ;;  %v1764_v22 = vld [vmem:[#allocation2 + $0x17] sm:$0x1] }
0x10c5   :  { %1687 = vrot.lane.b32.xlu1 %v2070_v24, %s2413_s4  ;;  %v2072_v7 = vadd.f32 -1.0, %v1672_v27 }
0x10c6   :  { %1689 = vrot.lane.b32.xlu0 %v2071_v25, %s2413_s4 }
0x10cd   :  { %1691 = vrot.lane.b32.xlu1 %v2072_v7, %s2413_s4 }
0x111d   :  { %v1686_v8 = vpop.permute.xlu2 %1685 }
0x111e   :  { %v1697_v28 = vmul.f32 %v1686_v8, %v2980_v2 }
0x1120   :  { %1705 = vrot.lane.b32.xlu1 %v1697_v28, %s2414_s11 }
0x1137   :  { %v1688_v9 = vpop.permute.xlu1 %1687 }
0x1138   :  { %v1690_v11 = vpop.permute.xlu0 %1689  ;;  %v1698_v30 = vmul.f32 %v1688_v9, %v1637_v17 }
0x1139   :  { %v1699_v32 = vmul.f32 %v1690_v11, %v1652_v19 }
0x113a   :  { %1707 = vrot.lane.b32.xlu0 %v1698_v30, %s2414_s11 }
0x113b   :  { %1709 = vrot.lane.b32.xlu2 %v1699_v32, %s2414_s11 }
0x113f   :  { %v1692_v39 = vpop.permute.xlu1 %1691 }
0x1140   :  { %v1700_v41 = vmul.f32 %v1692_v39, %v1667_v26 }
0x1142   :  { %1711 = vrot.lane.b32.xlu0 %v1700_v41, %s2414_s11 }
0x1192   :  { %v1706_v40 = vpop.permute.xlu1 %1705 }
0x1193   :  { %v2998_v43 = vadd.f32 %v1706_v40, %v1677_v33 }
0x1195   :  { %2271 = vtanh.f32 %v2998_v43  ;;  %v1710_v35 = vpop.permute.xlu2 %1709 }
0x1196   :  { %v3002_v34 = vadd.f32 %v1710_v35, %v1679_v45 }
0x1198   :  { %2273 = vtanh.f32 %v3002_v34 }
0x119b   :  { %v2272_v46 = vpop.eup %2271 }
0x119c   :  { %1729 = vrot.lane.b32.xlu0 %v2272_v46, %s2413_s4 }
0x119e   :  { %v2274_v36 = vpop.eup %2273 }
0x119f   :  { %1733 = vrot.lane.b32.xlu1 %v2274_v36, %s2413_s4 }
0x11ac   :  { %v1708_v49 = vpop.permute.xlu0 %1707 }
0x11ad   :  { %v3008_v50 = vadd.f32 %v1708_v49, %v1678_v31 }
0x11af   :  { %2275 = vtanh.f32 %v3008_v50 }
0x11b4   :  { %v1712_v51 = vpop.permute.xlu0 %1711 }
0x11b5   :  { %v2276_v47 = vpop.eup %2275  ;;  %v3012_v53 = vadd.f32 %v1712_v51, %v1680_v54 }
0x11b6   :  { %1731 = vrot.lane.b32.xlu2 %v2276_v47, %s2413_s4 }
0x11b7   :  { %2277 = vtanh.f32 %v3012_v53 }
0x11bd   :  { %v2278_v58 = vpop.eup %2277 }
0x11be   :  { %1735 = vrot.lane.b32.xlu2 %v2278_v58, %s2413_s4 }
0x120e   :  { %v1730_v29 = vpop.permute.xlu0 %1729 }
0x120f   :  { %v1741_v61 = vmul.f32 %v1730_v29, %v2980_v2 }
0x1210   :  { %v1732_v42 = vpop.permute.xlu2 %1731 }
0x1211   :  { %v1742_v60 = vmul.f32 %v1732_v42, %v1637_v17  ;;  %v1734_v38 = vpop.permute.xlu1 %1733 }
0x1212   :  { %v1743_v37 = vmul.f32 %v1734_v38, %v1652_v19 }
0x1213   :  { %v1749_v62 = vrot.slane %v1742_v60, 7 }
0x1214   :  { %v1752_v63 = vrot.slane %v1743_v37, 6 }
0x1215   :  { %v1750_v48 = vsel %vm103_vm1, %v1749_v62, %v1741_v61 }
0x1216   :  { %v1751_v55 = vsel %vm3191_vm2, %v1749_v62, %v1750_v48  ;;  %v1766_v13 = vsel %vm3194_vm11, %v1752_v63, %v1750_v48 }
0x1217   :  { %v1753_v1 = vsel %vm3192_vm3, %v1752_v63, %v1751_v55 }
0x1218   :  { %v1754_v12 = vsel %vm3193_vm9, %v1752_v63, %v1753_v1  ;;  %v1736_v14 = vpop.permute.xlu2 %1735 }
0x1219   :  { %v1744_v56 = vmul.f32 %v1736_v14, %v1667_v26 }
0x121b   :  { %v1755_v3 = vrot.slane %v1744_v56, 5 }
0x121d   :  { %v1767_v4 = vsel %vm3195_vm13, %v1755_v3, %v1766_v13  ;;  %v1756_v52 = vsel %vm3196_vm14, %v1755_v3, %v1754_v12 }
0x121e   :  { %1768 = vrot.lane.b32.xlu1 %v1767_v4, %s2414_s11  ;;  %v3027_v2 = vsel %vm3197_vm4, %v1755_v3, %v1756_v52 }
0x1290   :  { %v1769_v15 = vpop.permute.xlu1 %1768 }
0x1291   :  { %2073 = vmatmul.msk.f32.vlgmr.msra.gmra.mxu2 %vm3198_vm5, %v1769_v15 }
0x1314   :  { %v1789_v16 = vpop.f32.mrf.mxu2 }
0x1315   :  { %v1793_v17 = vrot.slane %v1789_v16, 1  ;;  %v1794_v18 = vrot.slane %v1789_v16, 2  ;;  %v1795_v19 = vrot.slane %v1789_v16, 3  ;;  %v1800_v20 = vadd.f32 %v1789_v16, %v1762_v5 }
0x1317   :  { %v1801_v24 = vadd.f32 %v1793_v17, %v1763_v21  ;;  %v1802_v25 = vadd.f32 %v1794_v18, %v1764_v22  ;;  %v1803_v26 = vadd.f32 %v1795_v19, %v1765_v23  ;;  %v2074_v27 = vmul.f32 -1.442695, %v1800_v20 }
0x1319   :  { %2279 = vpow2.f32 %v2074_v27  ;;  %v2075_v7 = vmul.f32 -1.442695, %v1801_v24  ;;  %v2076_v8 = vmul.f32 -1.442695, %v1802_v25  ;;  %v2077_v28 = vmul.f32 -1.442695, %v1803_v26 }
0x131b   :  { %2281 = vpow2.f32 %v2075_v7 }
0x131c   :  { %2283 = vpow2.f32 %v2076_v8 }
0x131d   :  { %2285 = vpow2.f32 %v2077_v28 }
0x131f   :  { %v2280_v9 = vpop.eup %2279 }
0x1320   :  { %v1816_v11 = vadd.f32 1.0, %v2280_v9 }
0x1321   :  { %v2282_v30 = vpop.eup %2281 }
0x1322   :  { %v2284_v32 = vpop.eup %2283  ;;  %v1817_v39 = vadd.f32 1.0, %v2282_v30  ;;  %2287 = vrcp.f32 %v1816_v11  ;;  %v1829_v45 = vand.u32 2147483647, %v1816_v11  ;;  %v1831_v35 = vand.u32 2147483648, %v1816_v11 }
0x1323   :  { %v2286_v41 = vpop.eup %2285  ;;  %v1818_v33 = vadd.f32 1.0, %v2284_v32  ;;  %vm1825_vm10 = vweird.f32 %v1816_v11 }
0x1324   :  { %v3030_v40 = vadd.f32 1.0, %v2286_v41  ;;  %2289 = vrcp.f32 %v1817_v39  ;;  %vm3033_vm6 = vcmp.eq.f32.partialorder %v1829_v45, 8.507059e+37  ;;  %v1832_v47 = vor.u32 1.1754944e-38, %v1831_v35 }
0x1325   :  { %2291 = vrcp.f32 %v1818_v33  ;;  %vm1840_vm12 = vweird.f32 %v1817_v39  ;;  %vm1855_vm0 = vweird.f32 %v1818_v33  ;;  %v1859_v60 = vand.u32 2147483647, %v1818_v33 }
0x1326   :  { %2293 = vrcp.f32 %v3030_v40  ;;  %v1861_v38 = vand.u32 2147483648, %v1818_v33  ;;  %v1844_v63 = vand.u32 2147483647, %v1817_v39  ;;  %v1846_v55 = vand.u32 2147483648, %v1817_v39 }
0x1327   :  { %vm1870_vm8 = vweird.f32 %v3030_v40  ;;  %v1874_v3 = vand.u32 2147483647, %v3030_v40  ;;  %v1876_v13 = vand.u32 2147483648, %v3030_v40  ;;  %vm1860_vm4 = vcmp.eq.f32.partialorder %v1859_v60, 8.507059e+37 }
0x1328   :  { %v2288_v46 = vpop.eup %2287  ;;  %v1862_v17 = vor.u32 1.1754944e-38, %v1861_v38  ;;  %v1847_v18 = vor.u32 1.1754944e-38, %v1846_v55  ;;  %vm1845_vm14 = vcmp.eq.f32.partialorder %v1844_v63, 8.507059e+37 }
0x1329   :  { %v1821_v36 = vmul.f32 %v2288_v46, %v1816_v11  ;;  %vm1826_vm7 = vweird.f32 %v2288_v46  ;;  %v1877_v8 = vor.u32 1.1754944e-38, %v1876_v13 }
0x132a   :  { %v2290_v31 = vpop.eup %2289  ;;  %vm1827_vm2 = vmor %vm1825_vm10, %vm1826_vm7  ;;  %vm1875_vm10 = vcmp.eq.f32.partialorder %v1874_v3, 8.507059e+37  ;;  %vm917_vm7 = vcmask 781824  }
0x132b   :  { %v2292_v54 = vpop.eup %2291  ;;  %v1822_v51 = vsub.f32 1.0, %v1821_v36  ;;  %v1836_v58 = vmul.f32 %v2290_v31, %v1817_v39  ;;  %vm1841_vm15 = vweird.f32 %v2290_v31 }
0x132c   :  { %v2294_v29 = vpop.eup %2293  ;;  %v1851_v42 = vmul.f32 %v2292_v54, %v1818_v33  ;;  %vm1856_vm3 = vweird.f32 %v2292_v54  ;;  %vm1842_vm11 = vmor %vm1840_vm12, %vm1841_vm15  ;;  %vm705_vm12 = vcmask 519424   ;;  %vm3202_vm15 = vcmask 1042434  }
0x132d   :  { %v1823_v37 = vmul.f32 %v2288_v46, %v1822_v51  ;;  %v1837_v61 = vsub.f32 1.0, %v1836_v58  ;;  %v1866_v62 = vmul.f32 %v2294_v29, %v3030_v40  ;;  %vm1871_vm9 = vweird.f32 %v2294_v29  ;;  %vm1857_vm13 = vmor %vm1855_vm0, %vm1856_vm3 }
0x132e   :  { %v1852_v48 = vsub.f32 1.0, %v1851_v42  ;;  %vm1872_vm5 = vmor %vm1870_vm8, %vm1871_vm9  ;;  %vm3201_vm0 = vcmask 1045509   ;;  %vm1127_vm8 = vcmask 1044224   ;;  %vm3205_vm3 = vcmask 1047559  }
0x132f   :  { %v1824_v1 = vadd.f32 %v2288_v46, %v1823_v37  ;;  %v1838_v12 = vmul.f32 %v2290_v31, %v1837_v61  ;;  %v1867_v14 = vsub.f32 1.0, %v1866_v62 }
0x1330   :  { %v1853_v56 = vmul.f32 %v2292_v54, %v1852_v48 }
0x1331   :  { %v1828_v4 = vsel %vm1827_vm2, %v2288_v46, %v1824_v1  ;;  %v1839_v52 = vadd.f32 %v2290_v31, %v1838_v12  ;;  %v1868_v15 = vmul.f32 %v2294_v29, %v1867_v14  ;;  %vm3204_vm2 = vcmask 1043459  }
0x1332   :  { %v3044_v5 = vsel %vm3033_vm6, %v1832_v47, %v1828_v4  ;;  %v1854_v16 = vadd.f32 %v2292_v54, %v1853_v56  ;;  %vm493_vm6 = vcmask 257024  }
0x1333   :  { %v1880_v19 = vmul.f32 2.0, %v3044_v5  ;;  %v1843_v20 = vsel %vm1842_vm11, %v2290_v31, %v1839_v52  ;;  %v1869_v21 = vadd.f32 %v2294_v29, %v1868_v15 }
0x1334   :  { %v1858_v22 = vsel %vm1857_vm13, %v2292_v54, %v1854_v16  ;;  %v3049_v23 = vsel %vm1845_vm14, %v1847_v18, %v1843_v20 }
0x1335   :  { %v2078_v24 = vadd.f32 -1.0, %v1880_v19  ;;  %v3053_v25 = vsel %vm1860_vm4, %v1862_v17, %v1858_v22  ;;  %v1881_v26 = vmul.f32 2.0, %v3049_v23  ;;  %v1873_v27 = vsel %vm1872_vm5, %v2294_v29, %v1869_v21 }
0x1336   :  { %v1882_v7 = vmul.f32 2.0, %v3053_v25  ;;  %v3058_v11 = vsel %vm1875_vm10, %v1877_v8, %v1873_v27  ;;  %v1889_v54 = vmul.f32 %v3049_v23, %v3008_v50 }
0x1337   :  { %1896 = vrot.lane.b32.xlu2 %v2078_v24, %s2413_s4  ;;  %v2079_v28 = vadd.f32 -1.0, %v1881_v26  ;;  %v1883_v30 = vmul.f32 2.0, %v3058_v11  ;;  %v1891_v29 = vmul.f32 %v3058_v11, %v3012_v53  ;;  %v1890_v53 = vmul.f32 %v3053_v25, %v3002_v34 }
0x1338   :  { %v2080_v9 = vadd.f32 -1.0, %v1882_v7 }
0x1339   :  { %1898 = vrot.lane.b32.xlu0 %v2079_v28, %s2413_s4  ;;  %v2081_v32 = vadd.f32 -1.0, %v1883_v30 }
0x133a   :  { %1900 = vrot.lane.b32.xlu1 %v2080_v9, %s2413_s4 }
0x1341   :  { %1902 = vrot.lane.b32.xlu0 %v2081_v32, %s2413_s4 }
0x1391   :  { %v1897_v39 = vpop.permute.xlu2 %1896 }
0x1392   :  { %v1908_v41 = vmul.f32 %v1897_v39, %v3044_v5 }
0x1394   :  { %1916 = vrot.lane.b32.xlu1 %v1908_v41, %s2414_s11 }
0x139c   :  { %702 = vrot.lane.b32.xlu1 %v2707_v57, %s2413_s4  ;;  %v1888_v57 = vmul.f32 %v3044_v5, %v2998_v43 }
0x13ab   :  { %v1899_v33 = vpop.permute.xlu0 %1898 }
0x13ac   :  { %v1901_v40 = vpop.permute.xlu1 %1900  ;;  %v1909_v45 = vmul.f32 %v1899_v33, %v3049_v23 }
0x13ad   :  { %v1910_v35 = vmul.f32 %v1901_v40, %v3053_v25 }
0x13ae   :  { %1918 = vrot.lane.b32.xlu2 %v1909_v45, %s2414_s11 }
0x13af   :  { %1920 = vrot.lane.b32.xlu0 %v1910_v35, %s2414_s11 }
0x13b3   :  { %v1903_v46 = vpop.permute.xlu0 %1902 }
0x13b4   :  { %v1911_v36 = vmul.f32 %v1903_v46, %v3058_v11 }
0x13b6   :  { %1922 = vrot.lane.b32.xlu2 %v1911_v36, %s2414_s11 }
0x13b7   :  { %490 = vrot.lane.b32.xlu0 %v2646_v59, %s2414_s11 }
0x13be   :  { %1336 = vrot.lane.b32.xlu2 %v2899_v44, %s2414_s11 }
0x1406   :  { %v1917_v31 = vpop.permute.xlu1 %1916 }
0x1407   :  { %v1928_v49 = vadd.f32 %v1917_v31, %v1888_v57 }
0x1408   :  { %v1919_v51 = vpop.permute.xlu2 %1918 }
0x1409   :  { %2295 = vtanh.f32 %v1928_v49  ;;  %v1929_v47 = vadd.f32 %v1919_v51, %v1889_v54 }
0x140b   :  { %2297 = vtanh.f32 %v1929_v47 }
0x140e   :  { %v703_v61 = vpop.permute.xlu1 %702 }
0x140f   :  { %v2296_v58 = vpop.eup %2295 }
0x1410   :  { %v1923_v59 = vpop.permute.xlu2 %1922  ;;  %1940 = vrot.lane.b32.xlu0 %v2296_v58, %s2413_s4 }
0x1411   :  { %v2298_v44 = vpop.eup %2297  ;;  %v1931_v42 = vadd.f32 %v1923_v59, %v1891_v29 }
0x1412   :  { %1942 = vrot.lane.b32.xlu1 %v2298_v44, %s2413_s4 }
0x1413   :  { %2299 = vtanh.f32 %v1931_v42 }
0x1418   :  { %v1337_v43 = vpop.permute.xlu2 %1336  ;;  %1547 = vrot.lane.b32.xlu0 %v2963_v6, %s2413_s4 }
0x1419   :  { %v2300_v50 = vpop.eup %2299  ;;  %1339 = vst.msk [vmem:[#allocation9 + $0x4] sm:$0xf] %vm493_vm6, %v1337_v43 }
0x141a   :  { %1946 = vrot.lane.b32.xlu1 %v2300_v50, %s2413_s4 }
0x1421   :  { %v1921_v60 = vpop.permute.xlu0 %1920 }
0x1422   :  { %v1930_v38 = vadd.f32 %v1921_v60, %v1890_v53  ;;  %1758 = vrot.lane.b32.xlu1 %v3027_v2, %s2416_s5 }
0x1424   :  { %2301 = vtanh.f32 %v1930_v38 }
0x1429   :  { %v491_v6 = vpop.permute.xlu0 %490 }
0x142a   :  { %v2302_v37 = vpop.eup %2301  ;;  %494 = vst.msk [vmem:[#allocation9] sm:$0xf] %vm493_vm6, %v491_v6 }
0x142b   :  { %706 = vst.msk [vmem:[#allocation9] sm:$0xf] %vm705_vm12, %v703_v61  ;;  %1944 = vrot.lane.b32.xlu2 %v2302_v37, %s2413_s4 }
0x1433   :  { %914 = vrot.lane.b32.xlu2 %v2771_v10, %s2416_s5 }
0x1482   :  { %v1941_v62 = vpop.permute.xlu0 %1940 }
0x1483   :  { %v1952_v2 = vmul.f32 %v1941_v62, %v3044_v5 }
0x1484   :  { %v1943_v34 = vpop.permute.xlu1 %1942 }
0x1485   :  { %v1945_v48 = vpop.permute.xlu2 %1944  ;;  %v1953_v63 = vmul.f32 %v1943_v34, %v3049_v23 }
0x1486   :  { %v1954_v1 = vmul.f32 %v1945_v48, %v3053_v25 }
0x1487   :  { %v1960_v55 = vrot.slane %v1953_v63, 7 }
0x1488   :  { %v1963_v3 = vrot.slane %v1954_v1, 6 }
0x1489   :  { %v1961_v12 = vsel %vm103_vm1, %v1960_v55, %v1952_v2  ;;  %vm3203_vm1 = vcmask 1046534  }
0x148a   :  { %v1548_v14 = vpop.permute.xlu0 %1547  ;;  %v1962_v56 = vsel %vm3201_vm0, %v1960_v55, %v1961_v12 }
0x148b   :  { %1550 = vst.msk [vmem:[#allocation9 + $0x4] sm:$0xf] %vm705_vm12, %v1548_v14  ;;  %v1964_v52 = vsel %vm3202_vm15, %v1963_v3, %v1962_v56 }
0x148c   :  { %v1947_v10 = vpop.permute.xlu1 %1946  ;;  %v1965_v5 = vsel %vm3203_vm1, %v1963_v3, %v1964_v52 }
0x148d   :  { %v915_v13 = vpop.permute.xlu2 %914  ;;  %v1955_v4 = vmul.f32 %v1947_v10, %v3058_v11 }
0x148e   :  { %918 = vst.msk [vmem:[#allocation9] sm:$0xf] %vm917_vm7, %v915_v13 }
0x148f   :  { %v1966_v15 = vrot.slane %v1955_v4, 5  ;;  %1128 = vst.msk [vmem:[#allocation9] sm:$0xf] %vm1127_vm8, %v2834_v0 }
0x1491   :  { %v1967_v16 = vsel %vm3204_vm2, %v1966_v15, %v1965_v5 }
0x1492   :  { %v1968_v18 = vsel %vm3205_vm3, %v1966_v15, %v1967_v16 }
0x1494   :  { %v1759_v17 = vpop.permute.xlu1 %1758 }
0x1495   :  { %1761 = vst.msk [vmem:[#allocation9 + $0x4] sm:$0xf] %vm917_vm7, %v1759_v17 }
0x1496   :  { %1970 = vst.msk [vmem:[#allocation9 + $0x4] sm:$0xf] %vm1127_vm8, %v1968_v18 }
0x1497   :  { %1994 = dma.vmem_to_hbm [thread:$0]  %s1990_s18, 128, %s1992_s21, [#allocation10]  }
0x1498   :  { %2403 = dma.done.wait [#allocation5], 512  }
0x1499   :  { %2404 = vsyncadd [#allocation5], 4294966784 }
0x149a   :  { %2405 = dma.done.wait [#allocation10], 128  }
0x149b   :  { %2406 = vsyncadd [#allocation10], 4294967168 }
0x149c   :  { %2003 = vsyncpa [#allocation4], 1 }
0x149d   :  { %2004 = vsyncpa [#allocation7], 1 }
0x149e   :  { %2005 = vsyncpa [#allocation5], 1 }
0x149f   :  { %2006 = vsyncpa [#allocation10], 1 }

</bundles_post_ra>
